<compile_context>
chip_gen: v5e
topology: v5e:2x2
jax: 0.10.0
libtpu: 0.0.40
codegen_flags: <defaults>
</compile_context>

<pallas_src>
import functools

import jax
import jax.numpy as jnp
from jax.experimental import pallas as pl
from jax.experimental.pallas import tpu as pltpu

# ---- module hyper-parameters (efficient-KAN defaults) -----------------------
GRID_SIZE = 5
SPLINE_ORDER = 3
GRID_RANGE = (-1.0, 1.0)
N_COEFF = GRID_SIZE + SPLINE_ORDER            # 8 spline basis functions per input feature
N_KNOTS = GRID_SIZE + 2 * SPLINE_ORDER + 1    # 12 knots per input feature
N_INTERVALS = N_KNOTS - 1                     # 11 order-0 knot intervals

IN_SIZE = 32
OUT_SIZE = 16

# uniform-grid constants (baked in; exact for the default grid)
H = (GRID_RANGE[1] - GRID_RANGE[0]) / GRID_SIZE           # 0.4
INV_H = 1.0 / H                                           # 2.5
KNOT0 = GRID_RANGE[0] - SPLINE_ORDER * H                  # -2.2
T_OFFSET = -KNOT0 * INV_H                                 # 5.5

PACK = 8          # rows packed per lane-row: 8*IN=256 lanes in, 8*OUT=128 lanes out
ROW_TILE = 2048   # rows per grid step (multiple of 8*PACK)


def _round_up(x, m):
    return (x + m - 1) // m * m


# ---- Pallas kernel -----------------------------------------------------------
def kan_kernel(x_ref, w_spl_ref, w_base_ref, out_ref):
    # x_ref     : (TN/PACK, PACK*IN)            packed input rows (lane-dense)
    # w_spl_ref : (N_COEFF, PACK*IN, PACK*OUT)  per-basis block-diagonal spline weights
    # w_base_ref: (PACK*IN, PACK*OUT)           block-diagonal base (SiLU) weight
    # out_ref   : (TN/PACK, PACK*OUT)           packed output rows (lane-dense)
    x = x_ref[...].astype(jnp.float32)

    # ---- base branch: SiLU(x) @ base_w (EUP handles the logistic) ------------
    silu = x * jax.nn.sigmoid(x)
    acc = jnp.dot(silu, w_base_ref[...], preferred_element_type=jnp.float32)

    # ---- uniform-grid localization (exact for the uniform knot grid) ---------
    t = x * INV_H + T_OFFSET          # knot-space coordinate
    i = jnp.floor(t)                  # interval index (float; out-of-range -> no match)
    u = t - i                         # local coordinate in [0, 1)
    u2 = u * u
    u3 = u2 * u
    # the 4 nonzero cubic B-spline values on interval i (taps for bases i, i-1, i-2, i-3)
    p0 = u3 * (1.0 / 6.0)                              # B_i
    p1 = 0.5 * ((u2 - u3) + u) + (1.0 / 6.0)           # B_{i-1}
    p2 = 0.5 * u3 - u2 + (2.0 / 3.0)                   # B_{i-2}
    p3 = (1.0 - p0) - (p1 + p2)                        # B_{i-3}  (partition of unity)

    # shared one-hot interval masks (each reused by up to 4 basis slots; CSE-friendly)
    eq = [i == float(v) for v in range(N_INTERVALS)]

    # ---- scatter the 4 taps into the 8 basis slots; one small MXU dot per slot
    for j in range(N_COEFF):
        bj = jnp.where(eq[j], p0,
             jnp.where(eq[j + 1], p1,
             jnp.where(eq[j + 2], p2,
             jnp.where(eq[j + 3], p3, 0.0))))
        acc = acc + jnp.dot(bj, w_spl_ref[j], preferred_element_type=jnp.float32)

    out_ref[...] = acc.astype(out_ref.dtype)


# ---- wrapper -----------------------------------------------------------------
@jax.jit
def decoder_forward(x, w_spl_blocks, w_base_block):
    orig_shape = x.shape
    in_size = orig_shape[-1]
    out_size = w_base_block.shape[-1] // PACK

    x2d = x.reshape(-1, in_size)          # keep native dtype; kernel casts to f32
    n = x2d.shape[0]

    row_quant = 8 * PACK                  # sublane (8) x row-packing (PACK)
    # at least 2 row blocks when possible so the "parallel" axis spans both
    # TensorCores on v7x; cap block size at ROW_TILE.
    half = _round_up(max(-(-n // 2), 1), row_quant)
    tn = min(ROW_TILE, half)
    n_pad = _round_up(n, tn)
    if n_pad != n:
        x2d = jnp.pad(x2d, ((0, n_pad - n), (0, 0)))
    n_blocks = n_pad // tn

    # contiguous (free) re-view: pack PACK consecutive rows into the lane dimension
    x_packed = x2d.reshape(n_pad // PACK, PACK * in_size)

    kdim = PACK * in_size
    ndim = PACK * out_size
    cost = pl.CostEstimate(
        flops=int(2 * (n_pad // PACK) * kdim * ndim * (N_COEFF + 1)
                  + 64 * n_pad * in_size),
        transcendentals=int(n_pad * in_size),
        bytes_accessed=int(4 * (n_pad * (in_size + out_size)
                                + w_spl_blocks.size + w_base_block.size)),
    )

    out_packed = pl.pallas_call(
        kan_kernel,
        out_shape=jax.ShapeDtypeStruct((n_pad // PACK, PACK * out_size), jnp.float32),
        grid=(n_blocks,),
        in_specs=[
            pl.BlockSpec((tn // PACK, PACK * in_size), lambda i: (i, 0)),   # packed rows
            pl.BlockSpec(w_spl_blocks.shape, lambda i: (0, 0, 0)),          # resident
            pl.BlockSpec(w_base_block.shape, lambda i: (0, 0)),             # resident
        ],
        out_specs=pl.BlockSpec((tn // PACK, PACK * out_size), lambda i: (i, 0)),
        compiler_params=pltpu.CompilerParams(
            dimension_semantics=("parallel",),
            vmem_limit_bytes=32 * 1024 * 1024),
        cost_estimate=cost,
    )(x_packed, w_spl_blocks, w_base_block)

    out2d = out_packed.reshape(n_pad, out_size)[:n]       # contiguous un-pack (free)
    return out2d.reshape(*orig_shape[:-1], out_size)


# ---- pure-JAX reference (mirrors the PyTorch efficient-KAN forward) ----------
def reference_forward(x, grid, base_w, scaled_spline_w):
    orig_shape = x.shape
    x2d = x.reshape(-1, orig_shape[-1]).astype(jnp.float32)
    base = jax.nn.silu(x2d) @ base_w.T
    xg = x2d[:, :, None]
    b = ((xg >= grid[None, :, :-1]) & (xg < grid[None, :, 1:])).astype(jnp.float32)
    for k in range(1, SPLINE_ORDER + 1):
        b = ((xg - grid[None, :, :-(k + 1)])
             / (grid[None, :, k:-1] - grid[None, :, :-(k + 1)]) * b[:, :, :-1]
             + (grid[None, :, k + 1:] - xg)
             / (grid[None, :, k + 1:] - grid[None, :, 1:-k]) * b[:, :, 1:])
    spline = b.reshape(x2d.shape[0], -1) @ scaled_spline_w.reshape(scaled_spline_w.shape[0], -1).T
    out = base + spline
    return out.reshape(*orig_shape[:-1], scaled_spline_w.shape[0])


# ---- deterministic parameter construction ------------------------------------
def make_params(key, in_size, out_size):
    k1, k2, k3 = jax.random.split(key, 3)
    knots = (jnp.arange(-SPLINE_ORDER, GRID_SIZE + SPLINE_ORDER + 1, dtype=jnp.float32) * H
             + GRID_RANGE[0])
    grid = jnp.broadcast_to(knots, (in_size, N_KNOTS))
    base_w = 0.1 * jax.random.normal(k1, (out_size, in_size), jnp.float32)
    spline_w = 0.1 * jax.random.normal(k2, (out_size, in_size, N_COEFF), jnp.float32)
    spline_scaler = 1.0 + 0.05 * jax.random.normal(k3, (out_size, in_size), jnp.float32)
    scaled_spline_w = spline_w * spline_scaler[..., None]          # (OUT, IN, C)
    return grid, base_w, scaled_spline_w


def make_kernel_weights(base_w, scaled_spline_w, pack=PACK):
    """Host-side block-diagonal weights for the row-packed kernel layout."""
    out_size, in_size, n_coeff = scaled_spline_w.shape
    eye = jnp.eye(pack, dtype=jnp.float32)
    # basis j: (IN, OUT) weight -> block-diagonal (PACK*IN, PACK*OUT)
    w_spl_blocks = jnp.stack([
        jnp.kron(eye, scaled_spline_w[:, :, j].T.astype(jnp.float32))
        for j in range(n_coeff)])                                   # (C, PACK*IN, PACK*OUT)
    w_base_block = jnp.kron(eye, base_w.T.astype(jnp.float32))      # (PACK*IN, PACK*OUT)
    return w_spl_blocks, w_base_block


if __name__ == "__main__":
    key = jax.random.PRNGKey(0)
    kx, kp = jax.random.split(key)

    # small input: (batch=2, seq=8, in_size=32) -> (2, 8, 16)
    x = jax.random.normal(kx, (2, 8, IN_SIZE), jnp.float32)

    grid, base_w, scaled_spline_w = make_params(kp, IN_SIZE, OUT_SIZE)
    w_spl_blocks, w_base_block = make_kernel_weights(base_w, scaled_spline_w)

    out = decoder_forward(x, w_spl_blocks, w_base_block)
    out = jax.block_until_ready(out)

    ref = reference_forward(x, grid, base_w, scaled_spline_w)
    assert out.shape == (2, 8, OUT_SIZE), out.shape
    err = float(jnp.max(jnp.abs(out - ref)))
    assert jnp.allclose(out, ref, atol=1e-4, rtol=1e-4), err

    print("KERNEL_OK")
</pallas_src>

<mosaic_0001>
module attributes {stable_mosaic.version = 11 : i64} {
  func.func @kan_kernel(%arg0: i32, %arg1: memref<8x256xf32, #tpu.memory_space<vmem>>, %arg2: memref<8x256x128xf32, #tpu.memory_space<vmem>>, %arg3: memref<256x128xf32, #tpu.memory_space<vmem>>, %arg4: memref<8x128xf32, #tpu.memory_space<vmem>>) attributes {dimension_semantics = [#tpu.dimension_semantics<parallel>], iteration_bounds = array<i64: 1>, scalar_prefetch = 0 : i64, scratch_operands = 0 : i64, tpu.core_type = #tpu.core_type<tc>, window_params = [{transform_indices = @transform_0, window_bounds = array<i64: 8, 256>}, {pipeline_mode = #tpu.pipeline_mode<synchronous>, transform_indices = @transform_1, window_bounds = array<i64: 8, 256, 128>}, {pipeline_mode = #tpu.pipeline_mode<synchronous>, transform_indices = @transform_2, window_bounds = array<i64: 256, 128>}, {transform_indices = @transform_3, window_bounds = array<i64: 8, 128>}]} {
    %c0 = arith.constant 0 : index
    %c0_0 = arith.constant 0 : index
    %0 = vector.load %arg1[%c0, %c0_0] : memref<8x256xf32, #tpu.memory_space<vmem>>, vector<8x256xf32>
    %1 = arith.negf %0 : vector<8x256xf32>
    %2 = math.exp %1 : vector<8x256xf32>
    %cst = arith.constant 1.000000e+00 : f32
    %3 = vector.broadcast %cst : f32 to vector<8x256xf32>
    %4 = arith.addf %3, %2 : vector<8x256xf32>
    %5 = arith.divf %3, %4 : vector<8x256xf32>
    %6 = arith.mulf %0, %5 : vector<8x256xf32>
    %c0_1 = arith.constant 0 : index
    %c0_2 = arith.constant 0 : index
    %7 = vector.load %arg3[%c0_1, %c0_2] : memref<256x128xf32, #tpu.memory_space<vmem>>, vector<256x128xf32>
    %cst_3 = arith.constant dense<0.000000e+00> : vector<8x128xf32>
    %8 = tpu.matmul %6, %7, %cst_3 {dimension_numbers = #tpu.dot_dimension_numbers<[1], [0], [0], [1], [0, 0, 1, 1], [], []>} : vector<8x256xf32>, vector<256x128xf32>, vector<8x128xf32> -> vector<8x128xf32>
    %cst_4 = arith.constant 2.500000e+00 : f32
    %9 = vector.broadcast %cst_4 : f32 to vector<8x256xf32>
    %10 = arith.mulf %0, %9 : vector<8x256xf32>
    %cst_5 = arith.constant 5.500000e+00 : f32
    %11 = vector.broadcast %cst_5 : f32 to vector<8x256xf32>
    %12 = arith.addf %10, %11 : vector<8x256xf32>
    %13 = math.floor %12 : vector<8x256xf32>
    %14 = arith.subf %12, %13 : vector<8x256xf32>
    %15 = arith.mulf %14, %14 : vector<8x256xf32>
    %16 = arith.mulf %15, %14 : vector<8x256xf32>
    %cst_6 = arith.constant 0.166666672 : f32
    %17 = vector.broadcast %cst_6 : f32 to vector<8x256xf32>
    %18 = arith.mulf %16, %17 : vector<8x256xf32>
    %19 = arith.subf %15, %16 : vector<8x256xf32>
    %20 = arith.addf %19, %14 : vector<8x256xf32>
    %cst_7 = arith.constant 5.000000e-01 : f32
    %21 = vector.broadcast %cst_7 : f32 to vector<8x256xf32>
    %22 = arith.mulf %21, %20 : vector<8x256xf32>
    %cst_8 = arith.constant 0.166666672 : f32
    %23 = vector.broadcast %cst_8 : f32 to vector<8x256xf32>
    %24 = arith.addf %22, %23 : vector<8x256xf32>
    %cst_9 = arith.constant 5.000000e-01 : f32
    %25 = vector.broadcast %cst_9 : f32 to vector<8x256xf32>
    %26 = arith.mulf %25, %16 : vector<8x256xf32>
    %27 = arith.subf %26, %15 : vector<8x256xf32>
    %cst_10 = arith.constant 0.666666686 : f32
    %28 = vector.broadcast %cst_10 : f32 to vector<8x256xf32>
    %29 = arith.addf %27, %28 : vector<8x256xf32>
    %cst_11 = arith.constant 1.000000e+00 : f32
    %30 = vector.broadcast %cst_11 : f32 to vector<8x256xf32>
    %31 = arith.subf %30, %18 : vector<8x256xf32>
    %32 = arith.addf %24, %29 : vector<8x256xf32>
    %33 = arith.subf %31, %32 : vector<8x256xf32>
    %cst_12 = arith.constant 0.000000e+00 : f32
    %34 = vector.broadcast %cst_12 : f32 to vector<8x256xf32>
    %35 = arith.cmpf oeq, %13, %34 : vector<8x256xf32>
    %cst_13 = arith.constant 1.000000e+00 : f32
    %36 = vector.broadcast %cst_13 : f32 to vector<8x256xf32>
    %37 = arith.cmpf oeq, %13, %36 : vector<8x256xf32>
    %cst_14 = arith.constant 2.000000e+00 : f32
    %38 = vector.broadcast %cst_14 : f32 to vector<8x256xf32>
    %39 = arith.cmpf oeq, %13, %38 : vector<8x256xf32>
    %cst_15 = arith.constant 3.000000e+00 : f32
    %40 = vector.broadcast %cst_15 : f32 to vector<8x256xf32>
    %41 = arith.cmpf oeq, %13, %40 : vector<8x256xf32>
    %cst_16 = arith.constant 4.000000e+00 : f32
    %42 = vector.broadcast %cst_16 : f32 to vector<8x256xf32>
    %43 = arith.cmpf oeq, %13, %42 : vector<8x256xf32>
    %cst_17 = arith.constant 5.000000e+00 : f32
    %44 = vector.broadcast %cst_17 : f32 to vector<8x256xf32>
    %45 = arith.cmpf oeq, %13, %44 : vector<8x256xf32>
    %cst_18 = arith.constant 6.000000e+00 : f32
    %46 = vector.broadcast %cst_18 : f32 to vector<8x256xf32>
    %47 = arith.cmpf oeq, %13, %46 : vector<8x256xf32>
    %cst_19 = arith.constant 7.000000e+00 : f32
    %48 = vector.broadcast %cst_19 : f32 to vector<8x256xf32>
    %49 = arith.cmpf oeq, %13, %48 : vector<8x256xf32>
    %cst_20 = arith.constant 8.000000e+00 : f32
    %50 = vector.broadcast %cst_20 : f32 to vector<8x256xf32>
    %51 = arith.cmpf oeq, %13, %50 : vector<8x256xf32>
    %cst_21 = arith.constant 9.000000e+00 : f32
    %52 = vector.broadcast %cst_21 : f32 to vector<8x256xf32>
    %53 = arith.cmpf oeq, %13, %52 : vector<8x256xf32>
    %cst_22 = arith.constant 1.000000e+01 : f32
    %54 = vector.broadcast %cst_22 : f32 to vector<8x256xf32>
    %55 = arith.cmpf oeq, %13, %54 : vector<8x256xf32>
    %cst_23 = arith.constant 0.000000e+00 : f32
    %56 = vector.broadcast %cst_23 : f32 to vector<8x256xf32>
    %57 = arith.select %41, %33, %56 : vector<8x256xi1>, vector<8x256xf32>
    %58 = arith.select %39, %29, %57 : vector<8x256xi1>, vector<8x256xf32>
    %59 = arith.select %37, %24, %58 : vector<8x256xi1>, vector<8x256xf32>
    %60 = arith.select %35, %18, %59 : vector<8x256xi1>, vector<8x256xf32>
    %c0_24 = arith.constant 0 : index
    %c0_25 = arith.constant 0 : index
    %c0_26 = arith.constant 0 : index
    %61 = vector.load %arg2[%c0_24, %c0_25, %c0_26] : memref<8x256x128xf32, #tpu.memory_space<vmem>>, vector<1x256x128xf32>
    %62 = vector.shape_cast %61 : vector<1x256x128xf32> to vector<256x128xf32>
    %cst_27 = arith.constant dense<0.000000e+00> : vector<8x128xf32>
    %63 = tpu.matmul %60, %62, %cst_27 {dimension_numbers = #tpu.dot_dimension_numbers<[1], [0], [0], [1], [0, 0, 1, 1], [], []>} : vector<8x256xf32>, vector<256x128xf32>, vector<8x128xf32> -> vector<8x128xf32>
    %64 = arith.addf %8, %63 : vector<8x128xf32>
    %cst_28 = arith.constant 0.000000e+00 : f32
    %65 = vector.broadcast %cst_28 : f32 to vector<8x256xf32>
    %66 = arith.select %43, %33, %65 : vector<8x256xi1>, vector<8x256xf32>
    %67 = arith.select %41, %29, %66 : vector<8x256xi1>, vector<8x256xf32>
    %68 = arith.select %39, %24, %67 : vector<8x256xi1>, vector<8x256xf32>
    %69 = arith.select %37, %18, %68 : vector<8x256xi1>, vector<8x256xf32>
    %c1 = arith.constant 1 : index
    %c0_29 = arith.constant 0 : index
    %c0_30 = arith.constant 0 : index
    %70 = vector.load %arg2[%c1, %c0_29, %c0_30] : memref<8x256x128xf32, #tpu.memory_space<vmem>>, vector<1x256x128xf32>
    %71 = vector.shape_cast %70 : vector<1x256x128xf32> to vector<256x128xf32>
    %cst_31 = arith.constant dense<0.000000e+00> : vector<8x128xf32>
    %72 = tpu.matmul %69, %71, %cst_31 {dimension_numbers = #tpu.dot_dimension_numbers<[1], [0], [0], [1], [0, 0, 1, 1], [], []>} : vector<8x256xf32>, vector<256x128xf32>, vector<8x128xf32> -> vector<8x128xf32>
    %73 = arith.addf %64, %72 : vector<8x128xf32>
    %cst_32 = arith.constant 0.000000e+00 : f32
    %74 = vector.broadcast %cst_32 : f32 to vector<8x256xf32>
    %75 = arith.select %45, %33, %74 : vector<8x256xi1>, vector<8x256xf32>
    %76 = arith.select %43, %29, %75 : vector<8x256xi1>, vector<8x256xf32>
    %77 = arith.select %41, %24, %76 : vector<8x256xi1>, vector<8x256xf32>
    %78 = arith.select %39, %18, %77 : vector<8x256xi1>, vector<8x256xf32>
    %c2 = arith.constant 2 : index
    %c0_33 = arith.constant 0 : index
    %c0_34 = arith.constant 0 : index
    %79 = vector.load %arg2[%c2, %c0_33, %c0_34] : memref<8x256x128xf32, #tpu.memory_space<vmem>>, vector<1x256x128xf32>
    %80 = vector.shape_cast %79 : vector<1x256x128xf32> to vector<256x128xf32>
    %cst_35 = arith.constant dense<0.000000e+00> : vector<8x128xf32>
    %81 = tpu.matmul %78, %80, %cst_35 {dimension_numbers = #tpu.dot_dimension_numbers<[1], [0], [0], [1], [0, 0, 1, 1], [], []>} : vector<8x256xf32>, vector<256x128xf32>, vector<8x128xf32> -> vector<8x128xf32>
    %82 = arith.addf %73, %81 : vector<8x128xf32>
    %cst_36 = arith.constant 0.000000e+00 : f32
    %83 = vector.broadcast %cst_36 : f32 to vector<8x256xf32>
    %84 = arith.select %47, %33, %83 : vector<8x256xi1>, vector<8x256xf32>
    %85 = arith.select %45, %29, %84 : vector<8x256xi1>, vector<8x256xf32>
    %86 = arith.select %43, %24, %85 : vector<8x256xi1>, vector<8x256xf32>
    %87 = arith.select %41, %18, %86 : vector<8x256xi1>, vector<8x256xf32>
    %c3 = arith.constant 3 : index
    %c0_37 = arith.constant 0 : index
    %c0_38 = arith.constant 0 : index
    %88 = vector.load %arg2[%c3, %c0_37, %c0_38] : memref<8x256x128xf32, #tpu.memory_space<vmem>>, vector<1x256x128xf32>
    %89 = vector.shape_cast %88 : vector<1x256x128xf32> to vector<256x128xf32>
    %cst_39 = arith.constant dense<0.000000e+00> : vector<8x128xf32>
    %90 = tpu.matmul %87, %89, %cst_39 {dimension_numbers = #tpu.dot_dimension_numbers<[1], [0], [0], [1], [0, 0, 1, 1], [], []>} : vector<8x256xf32>, vector<256x128xf32>, vector<8x128xf32> -> vector<8x128xf32>
    %91 = arith.addf %82, %90 : vector<8x128xf32>
    %cst_40 = arith.constant 0.000000e+00 : f32
    %92 = vector.broadcast %cst_40 : f32 to vector<8x256xf32>
    %93 = arith.select %49, %33, %92 : vector<8x256xi1>, vector<8x256xf32>
    %94 = arith.select %47, %29, %93 : vector<8x256xi1>, vector<8x256xf32>
    %95 = arith.select %45, %24, %94 : vector<8x256xi1>, vector<8x256xf32>
    %96 = arith.select %43, %18, %95 : vector<8x256xi1>, vector<8x256xf32>
    %c4 = arith.constant 4 : index
    %c0_41 = arith.constant 0 : index
    %c0_42 = arith.constant 0 : index
    %97 = vector.load %arg2[%c4, %c0_41, %c0_42] : memref<8x256x128xf32, #tpu.memory_space<vmem>>, vector<1x256x128xf32>
    %98 = vector.shape_cast %97 : vector<1x256x128xf32> to vector<256x128xf32>
    %cst_43 = arith.constant dense<0.000000e+00> : vector<8x128xf32>
    %99 = tpu.matmul %96, %98, %cst_43 {dimension_numbers = #tpu.dot_dimension_numbers<[1], [0], [0], [1], [0, 0, 1, 1], [], []>} : vector<8x256xf32>, vector<256x128xf32>, vector<8x128xf32> -> vector<8x128xf32>
    %100 = arith.addf %91, %99 : vector<8x128xf32>
    %cst_44 = arith.constant 0.000000e+00 : f32
    %101 = vector.broadcast %cst_44 : f32 to vector<8x256xf32>
    %102 = arith.select %51, %33, %101 : vector<8x256xi1>, vector<8x256xf32>
    %103 = arith.select %49, %29, %102 : vector<8x256xi1>, vector<8x256xf32>
    %104 = arith.select %47, %24, %103 : vector<8x256xi1>, vector<8x256xf32>
    %105 = arith.select %45, %18, %104 : vector<8x256xi1>, vector<8x256xf32>
    %c5 = arith.constant 5 : index
    %c0_45 = arith.constant 0 : index
    %c0_46 = arith.constant 0 : index
    %106 = vector.load %arg2[%c5, %c0_45, %c0_46] : memref<8x256x128xf32, #tpu.memory_space<vmem>>, vector<1x256x128xf32>
    %107 = vector.shape_cast %106 : vector<1x256x128xf32> to vector<256x128xf32>
    %cst_47 = arith.constant dense<0.000000e+00> : vector<8x128xf32>
    %108 = tpu.matmul %105, %107, %cst_47 {dimension_numbers = #tpu.dot_dimension_numbers<[1], [0], [0], [1], [0, 0, 1, 1], [], []>} : vector<8x256xf32>, vector<256x128xf32>, vector<8x128xf32> -> vector<8x128xf32>
    %109 = arith.addf %100, %108 : vector<8x128xf32>
    %cst_48 = arith.constant 0.000000e+00 : f32
    %110 = vector.broadcast %cst_48 : f32 to vector<8x256xf32>
    %111 = arith.select %53, %33, %110 : vector<8x256xi1>, vector<8x256xf32>
    %112 = arith.select %51, %29, %111 : vector<8x256xi1>, vector<8x256xf32>
    %113 = arith.select %49, %24, %112 : vector<8x256xi1>, vector<8x256xf32>
    %114 = arith.select %47, %18, %113 : vector<8x256xi1>, vector<8x256xf32>
    %c6 = arith.constant 6 : index
    %c0_49 = arith.constant 0 : index
    %c0_50 = arith.constant 0 : index
    %115 = vector.load %arg2[%c6, %c0_49, %c0_50] : memref<8x256x128xf32, #tpu.memory_space<vmem>>, vector<1x256x128xf32>
    %116 = vector.shape_cast %115 : vector<1x256x128xf32> to vector<256x128xf32>
    %cst_51 = arith.constant dense<0.000000e+00> : vector<8x128xf32>
    %117 = tpu.matmul %114, %116, %cst_51 {dimension_numbers = #tpu.dot_dimension_numbers<[1], [0], [0], [1], [0, 0, 1, 1], [], []>} : vector<8x256xf32>, vector<256x128xf32>, vector<8x128xf32> -> vector<8x128xf32>
    %118 = arith.addf %109, %117 : vector<8x128xf32>
    %cst_52 = arith.constant 0.000000e+00 : f32
    %119 = vector.broadcast %cst_52 : f32 to vector<8x256xf32>
    %120 = arith.select %55, %33, %119 : vector<8x256xi1>, vector<8x256xf32>
    %121 = arith.select %53, %29, %120 : vector<8x256xi1>, vector<8x256xf32>
    %122 = arith.select %51, %24, %121 : vector<8x256xi1>, vector<8x256xf32>
    %123 = arith.select %49, %18, %122 : vector<8x256xi1>, vector<8x256xf32>
    %c7 = arith.constant 7 : index
    %c0_53 = arith.constant 0 : index
    %c0_54 = arith.constant 0 : index
    %124 = vector.load %arg2[%c7, %c0_53, %c0_54] : memref<8x256x128xf32, #tpu.memory_space<vmem>>, vector<1x256x128xf32>
    %125 = vector.shape_cast %124 : vector<1x256x128xf32> to vector<256x128xf32>
    %cst_55 = arith.constant dense<0.000000e+00> : vector<8x128xf32>
    %126 = tpu.matmul %123, %125, %cst_55 {dimension_numbers = #tpu.dot_dimension_numbers<[1], [0], [0], [1], [0, 0, 1, 1], [], []>} : vector<8x256xf32>, vector<256x128xf32>, vector<8x128xf32> -> vector<8x128xf32>
    %127 = arith.addf %118, %126 : vector<8x128xf32>
    %c0_56 = arith.constant 0 : index
    %c0_57 = arith.constant 0 : index
    %128 = vector.load %arg4[%c0_56, %c0_57] : memref<8x128xf32, #tpu.memory_space<vmem>>, vector<8x128xf32>
    tpu.vector_store %arg4[%c0_56, %c0_57], %127 {strides = array<i32>} : memref<8x128xf32, #tpu.memory_space<vmem>>, vector<8x128xf32>,
    return
  }
  func.func @transform_0(%arg0: i32) -> (i32, i32) {
    %c0_i32 = arith.constant 0 : i32
    %c0_i32_0 = arith.constant 0 : i32
    return %arg0, %c0_i32 : i32, i32
  }
  func.func @transform_1(%arg0: i32) -> (i32, i32, i32) {
    %c0_i32 = arith.constant 0 : i32
    %c0_i32_0 = arith.constant 0 : i32
    %c0_i32_1 = arith.constant 0 : i32
    %c0_i32_2 = arith.constant 0 : i32
    return %c0_i32, %c0_i32_0, %c0_i32_1 : i32, i32, i32
  }
  func.func @transform_2(%arg0: i32) -> (i32, i32) {
    %c0_i32 = arith.constant 0 : i32
    %c0_i32_0 = arith.constant 0 : i32
    %c0_i32_1 = arith.constant 0 : i32
    return %c0_i32, %c0_i32_0 : i32, i32
  }
  func.func @transform_3(%arg0: i32) -> (i32, i32) {
    %c0_i32 = arith.constant 0 : i32
    %c0_i32_0 = arith.constant 0 : i32
    return %arg0, %c0_i32 : i32, i32
  }
}

</mosaic_0001>

<bundles_post_ra>
// kernel: decoder_forward.1
= control target key start
LH: loop header
LB: loop body
LE: loop exit
PB: predicated region body
PF: predicated region fallthrough
CT: control target
= control target key end

     0   :  { %8 = vsyncpa [#allocation3], 0  ;;  %s1303_s0 = inlined_call_operand.vmem [shape: f32[8,256], index: 0, kind: input, shape index: {}]   ;;  %s1304_s1 = inlined_call_operand.hbm [shape: f32[8,256,128], index: 1, kind: input, shape index: {}]   ;;  %s1305_s2 = inlined_call_operand.hbm [shape: f32[256,128], index: 2, kind: input, shape index: {}]   ;;  %s1306_s3 = inlined_call_operand.vmem [shape: f32[8,128], index: 3, kind: output, shape index: {}]  }
   0x1   :  { %s16_s14 = sshll.u32 %s1304_s1, 4  ;;  %s17_s14 = int_to_ptr.hbm [resolvable:$true] %s16_s14 }
   0x2   :  { %9 = vsyncpa [#allocation5], 0  ;;  %s943_s15 = smov [#allocation2]   ;;  %s29_s19 = sshll.u32 %s1305_s2, 4  ;;  %s30_s19 = int_to_ptr.hbm [resolvable:$true] %s29_s19 }
   0x3   :  { %s18_s16 = sshll.u32 %s943_s15, 4  ;;  %s944_s20 = smov 128   ;;  %s19_s16 = int_to_ptr.vmem [resolvable:$true] %s18_s16 }
   0x4   :  { %s945_s21 = smov 8   ;;  %s946_s22 = smov [#allocation4]  }
   0x5   :  { %24 = dma.hbm_to_vmem [thread:$0]  %s17_s14, 32768, %s19_s16, [#allocation3], %s944_s20, %s944_s20, %s945_s21  }
   0x6   :  { %s31_s23 = sshll.u32 %s946_s22, 4  ;;  %s32_s23 = int_to_ptr.vmem [resolvable:$true] %s31_s23 }
   0x7   :  { %37 = dma.hbm_to_vmem [thread:$0]  %s30_s19, 4096, %s32_s23, [#allocation5], %s944_s20, %s944_s20, %s945_s21  }
   0x8   :  { %939 = dma.done.wait [#allocation3], 32768  }
   0x9   :  { %940 = vsyncadd [#allocation3], 4294934528 }
   0xa   :  { %941 = dma.done.wait [#allocation5], 4096  }
   0xb   :  { %942 = vsyncadd [#allocation5], 4294963200  ;;  %v199_v0 = vld [vmem:[#allocation2 + $0x78] sm:$0xff]  ;;  %v198_v4 = vld [vmem:[#allocation2 + $0x70] sm:$0xff] }
   0xc   :  { %v215_v1 = vld [vmem:[#allocation2 + $0xf8] sm:$0xff]  ;;  %216 = vmatpush.msra.mxu0 %v199_v0  ;;  %v214_v5 = vld [vmem:[#allocation2 + $0xf0] sm:$0xff]  ;;  %v197_v8 = vld [vmem:[#allocation2 + $0x68] sm:$0xff] }
   0xd   :  { %v103_v2 = vld [vmem:[#allocation4 + $0x78] sm:$0xff]  ;;  %236 = vmatpush.msra.mxu1 %v215_v1  ;;  %v102_v6 = vld [vmem:[#allocation4 + $0x70] sm:$0xff]  ;;  %v213_v9 = vld [vmem:[#allocation2 + $0xe8] sm:$0xff] }
   0xe   :  { %v119_v3 = vld [vmem:[#allocation4 + $0xf8] sm:$0xff]  ;;  %256 = vmatpush.msra.mxu2 %v103_v2  ;;  %v118_v7 = vld [vmem:[#allocation4 + $0xf0] sm:$0xff]  ;;  %217 = vmatpush.msra.mxu0 %v198_v4  ;;  %v101_v10 = vld [vmem:[#allocation4 + $0x68] sm:$0xff] }
   0xf   :  { %276 = vmatpush.msra.mxu3 %v119_v3  ;;  %237 = vmatpush.msra.mxu1 %v214_v5  ;;  %v117_v11 = vld [vmem:[#allocation4 + $0xe8] sm:$0xff]  ;;  %v196_v12 = vld [vmem:[#allocation2 + $0x60] sm:$0xff]  ;;  %v195_v16 = vld [vmem:[#allocation2 + $0x58] sm:$0xff] }
  0x10   :  { %257 = vmatpush.msra.mxu2 %v102_v6  ;;  %v212_v13 = vld [vmem:[#allocation2 + $0xe0] sm:$0xff]  ;;  %218 = vmatpush.msra.mxu0 %v197_v8  ;;  %v211_v17 = vld [vmem:[#allocation2 + $0xd8] sm:$0xff]  ;;  %v194_v20 = vld [vmem:[#allocation2 + $0x50] sm:$0xff] }
  0x11   :  { %277 = vmatpush.msra.mxu3 %v118_v7  ;;  %238 = vmatpush.msra.mxu1 %v213_v9  ;;  %v100_v14 = vld [vmem:[#allocation4 + $0x60] sm:$0xff]  ;;  %v99_v18 = vld [vmem:[#allocation4 + $0x58] sm:$0xff]  ;;  %v210_v21 = vld [vmem:[#allocation2 + $0xd0] sm:$0xff] }
  0x12   :  { %v116_v15 = vld [vmem:[#allocation4 + $0xe0] sm:$0xff]  ;;  %258 = vmatpush.msra.mxu2 %v101_v10  ;;  %219 = vmatpush.msra.mxu0 %v196_v12  ;;  %v115_v19 = vld [vmem:[#allocation4 + $0xd8] sm:$0xff]  ;;  %v98_v22 = vld [vmem:[#allocation4 + $0x50] sm:$0xff] }
  0x13   :  { %278 = vmatpush.msra.mxu3 %v117_v11  ;;  %239 = vmatpush.msra.mxu1 %v212_v13  ;;  %v114_v23 = vld [vmem:[#allocation4 + $0xd0] sm:$0xff]  ;;  %v193_v24 = vld [vmem:[#allocation2 + $0x48] sm:$0xff]  ;;  %v192_v28 = vld [vmem:[#allocation2 + $0x40] sm:$0xff] }
  0x14   :  { %259 = vmatpush.msra.mxu2 %v100_v14  ;;  %220 = vmatpush.msra.mxu0 %v195_v16  ;;  %v209_v25 = vld [vmem:[#allocation2 + $0xc8] sm:$0xff]  ;;  %v208_v29 = vld [vmem:[#allocation2 + $0xc0] sm:$0xff]  ;;  %v191_v32 = vld [vmem:[#allocation2 + $0x38] sm:$0xff] }
  0x15   :  { %279 = vmatpush.msra.mxu3 %v116_v15  ;;  %240 = vmatpush.msra.mxu1 %v211_v17  ;;  %v97_v26 = vld [vmem:[#allocation4 + $0x48] sm:$0xff]  ;;  %v96_v30 = vld [vmem:[#allocation4 + $0x40] sm:$0xff]  ;;  %v207_v33 = vld [vmem:[#allocation2 + $0xb8] sm:$0xff] }
  0x16   :  { %260 = vmatpush.msra.mxu2 %v99_v18  ;;  %221 = vmatpush.msra.mxu0 %v194_v20  ;;  %v113_v27 = vld [vmem:[#allocation4 + $0xc8] sm:$0xff]  ;;  %v112_v31 = vld [vmem:[#allocation4 + $0xc0] sm:$0xff]  ;;  %v95_v34 = vld [vmem:[#allocation4 + $0x38] sm:$0xff] }
  0x17   :  { %280 = vmatpush.msra.mxu3 %v115_v19  ;;  %241 = vmatpush.msra.mxu1 %v210_v21  ;;  %v111_v35 = vld [vmem:[#allocation4 + $0xb8] sm:$0xff]  ;;  %v190_v36 = vld [vmem:[#allocation2 + $0x30] sm:$0xff]  ;;  %v189_v40 = vld [vmem:[#allocation2 + $0x28] sm:$0xff] }
  0x18   :  { %261 = vmatpush.msra.mxu2 %v98_v22  ;;  %222 = vmatpush.msra.mxu0 %v193_v24  ;;  %v206_v37 = vld [vmem:[#allocation2 + $0xb0] sm:$0xff]  ;;  %v205_v41 = vld [vmem:[#allocation2 + $0xa8] sm:$0xff]  ;;  %v188_v44 = vld [vmem:[#allocation2 + $0x20] sm:$0xff] }
  0x19   :  { %281 = vmatpush.msra.mxu3 %v114_v23  ;;  %242 = vmatpush.msra.mxu1 %v209_v25  ;;  %v94_v38 = vld [vmem:[#allocation4 + $0x30] sm:$0xff]  ;;  %v93_v42 = vld [vmem:[#allocation4 + $0x28] sm:$0xff]  ;;  %v204_v45 = vld [vmem:[#allocation2 + $0xa0] sm:$0xff] }
  0x1a   :  { %262 = vmatpush.msra.mxu2 %v97_v26  ;;  %223 = vmatpush.msra.mxu0 %v192_v28  ;;  %v110_v39 = vld [vmem:[#allocation4 + $0xb0] sm:$0xff]  ;;  %v109_v43 = vld [vmem:[#allocation4 + $0xa8] sm:$0xff]  ;;  %v92_v46 = vld [vmem:[#allocation4 + $0x20] sm:$0xff] }
  0x1b   :  { %282 = vmatpush.msra.mxu3 %v113_v27  ;;  %243 = vmatpush.msra.mxu1 %v208_v29  ;;  %v108_v47 = vld [vmem:[#allocation4 + $0xa0] sm:$0xff]  ;;  %v187_v48 = vld [vmem:[#allocation2 + $0x18] sm:$0xff]  ;;  %v186_v52 = vld [vmem:[#allocation2 + $0x10] sm:$0xff] }
  0x1c   :  { %263 = vmatpush.msra.mxu2 %v96_v30  ;;  %224 = vmatpush.msra.mxu0 %v191_v32  ;;  %v203_v49 = vld [vmem:[#allocation2 + $0x98] sm:$0xff]  ;;  %v202_v53 = vld [vmem:[#allocation2 + $0x90] sm:$0xff]  ;;  %v185_v56 = vld [vmem:[#allocation2 + $0x8] sm:$0xff] }
  0x1d   :  { %283 = vmatpush.msra.mxu3 %v112_v31  ;;  %244 = vmatpush.msra.mxu1 %v207_v33  ;;  %v91_v50 = vld [vmem:[#allocation4 + $0x18] sm:$0xff]  ;;  %v90_v54 = vld [vmem:[#allocation4 + $0x10] sm:$0xff]  ;;  %v201_v57 = vld [vmem:[#allocation2 + $0x88] sm:$0xff] }
  0x1e   :  { %264 = vmatpush.msra.mxu2 %v95_v34  ;;  %225 = vmatpush.msra.mxu0 %v190_v36  ;;  %v107_v51 = vld [vmem:[#allocation4 + $0x98] sm:$0xff]  ;;  %v106_v55 = vld [vmem:[#allocation4 + $0x90] sm:$0xff]  ;;  %v89_v58 = vld [vmem:[#allocation4 + $0x8] sm:$0xff] }
  0x1f   :  { %284 = vmatpush.msra.mxu3 %v111_v35  ;;  %245 = vmatpush.msra.mxu1 %v206_v37  ;;  %v105_v59 = vld [vmem:[#allocation4 + $0x88] sm:$0xff]  ;;  %v184_v60 = vld [vmem:[#allocation2] sm:$0xff]  ;;  %v320_v0 = vld [vmem:[#allocation2 + $0x178] sm:$0xff] }
  0x20   :  { %265 = vmatpush.msra.mxu2 %v94_v38  ;;  %226 = vmatpush.msra.mxu0 %v189_v40  ;;  %v200_v61 = vld [vmem:[#allocation2 + $0x80] sm:$0xff]  ;;  %v336_v1 = vld [vmem:[#allocation2 + $0x1f8] sm:$0xff]  ;;  %v319_v4 = vld [vmem:[#allocation2 + $0x170] sm:$0xff] }
  0x21   :  { %285 = vmatpush.msra.mxu3 %v110_v39  ;;  %246 = vmatpush.msra.mxu1 %v205_v41  ;;  %v88_v62 = vld [vmem:[#allocation4] sm:$0xff]  ;;  %v402_v2 = vld [vmem:[#allocation2 + $0x278] sm:$0xff]  ;;  %v335_v5 = vld [vmem:[#allocation2 + $0x1f0] sm:$0xff] }
  0x22   :  { %266 = vmatpush.msra.mxu2 %v93_v42  ;;  %227 = vmatpush.msra.mxu0 %v188_v44  ;;  %v104_v63 = vld [vmem:[#allocation4 + $0x80] sm:$0xff]  ;;  %v418_v3 = vld [vmem:[#allocation2 + $0x2f8] sm:$0xff]  ;;  %v401_v6 = vld [vmem:[#allocation2 + $0x270] sm:$0xff] }
  0x23   :  { %286 = vmatpush.msra.mxu3 %v109_v43  ;;  %247 = vmatpush.msra.mxu1 %v204_v45  ;;  %v417_v7 = vld [vmem:[#allocation2 + $0x2f0] sm:$0xff]  ;;  %v318_v8 = vld [vmem:[#allocation2 + $0x168] sm:$0xff]  ;;  %v317_v12 = vld [vmem:[#allocation2 + $0x160] sm:$0xff] }
  0x24   :  { %267 = vmatpush.msra.mxu2 %v92_v46  ;;  %228 = vmatpush.msra.mxu0 %v187_v48  ;;  %v334_v9 = vld [vmem:[#allocation2 + $0x1e8] sm:$0xff]  ;;  %v333_v13 = vld [vmem:[#allocation2 + $0x1e0] sm:$0xff]  ;;  %v316_v16 = vld [vmem:[#allocation2 + $0x158] sm:$0xff] }
  0x25   :  { %287 = vmatpush.msra.mxu3 %v108_v47  ;;  %248 = vmatpush.msra.mxu1 %v203_v49  ;;  %v400_v10 = vld [vmem:[#allocation2 + $0x268] sm:$0xff]  ;;  %v399_v14 = vld [vmem:[#allocation2 + $0x260] sm:$0xff]  ;;  %v332_v17 = vld [vmem:[#allocation2 + $0x1d8] sm:$0xff] }
  0x26   :  { %268 = vmatpush.msra.mxu2 %v91_v50  ;;  %229 = vmatpush.msra.mxu0 %v186_v52  ;;  %v416_v11 = vld [vmem:[#allocation2 + $0x2e8] sm:$0xff]  ;;  %v415_v15 = vld [vmem:[#allocation2 + $0x2e0] sm:$0xff]  ;;  %v398_v24 = vld [vmem:[#allocation2 + $0x258] sm:$0xff] }
  0x27   :  { %288 = vmatpush.msra.mxu3 %v107_v51  ;;  %249 = vmatpush.msra.mxu1 %v202_v53  ;;  %v976_v18 = vld [vmem:[%s1303_s0] sm:$0xff]  ;;  %v981_v19 = vld [vmem:[%s1303_s0 + $0x8] sm:$0xff]  ;;  %v414_v25 = vld [vmem:[#allocation2 + $0x2d8] sm:$0xff] }
  0x28   :  { %269 = vmatpush.msra.mxu2 %v90_v54  ;;  %230 = vmatpush.msra.mxu0 %v185_v56  ;;  %v877_v20 = vmul.f32 -1.442695, %v976_v18  ;;  %v120_v21 = vmul.f32 2.5, %v976_v18  ;;  %v878_v22 = vmul.f32 -1.442695, %v981_v19  ;;  %v121_v23 = vmul.f32 2.5, %v981_v19 }
  0x29   :  { %289 = vmatpush.msra.mxu3 %v106_v55  ;;  %250 = vmatpush.msra.mxu1 %v201_v57  ;;  %v315_v26 = vld [vmem:[#allocation2 + $0x150] sm:$0xff]  ;;  %v314_v32 = vld [vmem:[#allocation2 + $0x148] sm:$0xff]  ;;  %v313_v38 = vld [vmem:[#allocation2 + $0x140] sm:$0xff] }
  0x2a   :  { %270 = vmatpush.msra.mxu2 %v89_v58  ;;  %231 = vmatpush.msra.mxu0 %v184_v60  ;;  %v331_v27 = vld [vmem:[#allocation2 + $0x1d0] sm:$0xff]  ;;  %883 = vpow2.f32 %v877_v20  ;;  %v122_v28 = vadd.f32 5.5, %v120_v21  ;;  %v123_v29 = vadd.f32 5.5, %v121_v23  ;;  %v330_v33 = vld [vmem:[#allocation2 + $0x1c8] sm:$0xff]  ;;  %v329_v39 = vld [vmem:[#allocation2 + $0x1c0] sm:$0xff] }
  0x2b   :  { %290 = vmatpush.msra.mxu3 %v105_v59  ;;  %251 = vmatpush.msra.mxu1 %v200_v61  ;;  %v397_v30 = vld [vmem:[#allocation2 + $0x250] sm:$0xff]  ;;  %885 = vpow2.f32 %v878_v22  ;;  %v396_v36 = vld [vmem:[#allocation2 + $0x248] sm:$0xff]  ;;  %v395_v42 = vld [vmem:[#allocation2 + $0x240] sm:$0xff] }
  0x2c   :  { %271 = vmatpush.msra.mxu2 %v88_v62  ;;  %337 = vmatpush.msrb.mxu0 %v320_v0  ;;  %v413_v31 = vld [vmem:[#allocation2 + $0x2d0] sm:$0xff]  ;;  %v987_v34 = vfloor.f32 %v122_v28  ;;  %v989_v35 = vfloor.f32 %v123_v29  ;;  %v412_v37 = vld [vmem:[#allocation2 + $0x2c8] sm:$0xff]  ;;  %v411_v43 = vld [vmem:[#allocation2 + $0x2c0] sm:$0xff] }
  0x2d   :  { %291 = vmatpush.msra.mxu3 %v104_v63  ;;  %357 = vmatpush.msrb.mxu1 %v336_v1  ;;  %v312_v45 = vld [vmem:[#allocation2 + $0x138] sm:$0xff]  ;;  %v311_v53 = vld [vmem:[#allocation2 + $0x130] sm:$0xff]  ;;  %v310_v60 = vld [vmem:[#allocation2 + $0x128] sm:$0xff] }
  0x2e   :  { %419 = vmatpush.msrb.mxu2 %v402_v2  ;;  %338 = vmatpush.msrb.mxu0 %v319_v4  ;;  %v126_v40 = vsub.f32 %v122_v28, %v987_v34  ;;  %v993_v41 = vsub.f32 %v123_v29, %v989_v35  ;;  %v328_v46 = vld [vmem:[#allocation2 + $0x1b8] sm:$0xff]  ;;  %v327_v54 = vld [vmem:[#allocation2 + $0x1b0] sm:$0xff]  ;;  %v326_v61 = vld [vmem:[#allocation2 + $0x1a8] sm:$0xff]  ;;  %vm156_vm0 = vcmp.eq.f32.partialorder %v987_v34, 1.0  ;;  %vm158_vm1 = vcmp.eq.f32.partialorder %v987_v34, 2.0 }
  0x2f   :  { %439 = vmatpush.msrb.mxu3 %v418_v3  ;;  %358 = vmatpush.msrb.mxu1 %v335_v5  ;;  %v394_v50 = vld [vmem:[#allocation2 + $0x238] sm:$0xff]  ;;  %v393_v57 = vld [vmem:[#allocation2 + $0x230] sm:$0xff]  ;;  %v392_v0 = vld [vmem:[#allocation2 + $0x228] sm:$0xff]  ;;  %vm160_vm2 = vcmp.eq.f32.partialorder %v987_v34, 3.0  ;;  %vm154_vm4 = vcmp.eq.f32.partialorder %v987_v34, 0.0  ;;  %vm161_vm5 = vcmp.eq.f32.partialorder %v989_v35, 3.0 }
  0x30   :  { %420 = vmatpush.msrb.mxu2 %v401_v6  ;;  %339 = vmatpush.msrb.mxu0 %v318_v8  ;;  %v884_v44 = vpop.eup %883  ;;  %v128_v47 = vmul.f32 %v126_v40, %v126_v40  ;;  %v997_v48 = vmul.f32 %v993_v41, %v993_v41  ;;  %v410_v51 = vld [vmem:[#allocation2 + $0x2b8] sm:$0xff]  ;;  %v409_v58 = vld [vmem:[#allocation2 + $0x2b0] sm:$0xff]  ;;  %v408_v1 = vld [vmem:[#allocation2 + $0x2a8] sm:$0xff]  ;;  %vm159_vm6 = vcmp.eq.f32.partialorder %v989_v35, 2.0  ;;  %vm162_vm7 = vcmp.eq.f32.partialorder %v987_v34, 4.0 }
  0x31   :  { %440 = vmatpush.msrb.mxu3 %v417_v7  ;;  %359 = vmatpush.msrb.mxu1 %v334_v9  ;;  %v886_v49 = vpop.eup %885  ;;  %v999_v52 = vadd.f32 1.0, %v884_v44  ;;  %v309_v2 = vld [vmem:[#allocation2 + $0x120] sm:$0xff]  ;;  %v390_v23 = vld [vmem:[#allocation2 + $0x218] sm:$0xff]  ;;  %v307_v28 = vld [vmem:[#allocation2 + $0x110] sm:$0xff]  ;;  %vm157_vm9 = vcmp.eq.f32.partialorder %v989_v35, 1.0  ;;  %vm164_vm13 = vcmp.eq.f32.partialorder %v987_v34, 5.0 }
  0x32   :  { %421 = vmatpush.msrb.mxu2 %v400_v10  ;;  %340 = vmatpush.msrb.mxu0 %v317_v12  ;;  %v130_v55 = vmul.f32 %v128_v47, %v126_v40  ;;  %v1001_v56 = vadd.f32 1.0, %v886_v49  ;;  %v131_v59 = vmul.f32 %v997_v48, %v993_v41  ;;  %v325_v3 = vld [vmem:[#allocation2 + $0x1a0] sm:$0xff]  ;;  %v323_v29 = vld [vmem:[#allocation2 + $0x190] sm:$0xff]  ;;  %vm165_vm14 = vcmp.eq.f32.partialorder %v989_v35, 5.0 }
  0x33   :  { %441 = vmatpush.msrb.mxu3 %v416_v11  ;;  %360 = vmatpush.msrb.mxu1 %v333_v13  ;;  %887 = vrcp.f32 %v999_v52  ;;  %v391_v7 = vld [vmem:[#allocation2 + $0x220] sm:$0xff]  ;;  %v308_v11 = vld [vmem:[#allocation2 + $0x118] sm:$0xff]  ;;  %vm61_vm3 = vweird.f32 %v999_v52  ;;  %v65_v12 = vand.u32 2147483647, %v999_v52 }
  0x34   :  { %422 = vmatpush.msrb.mxu2 %v399_v14  ;;  %341 = vmatpush.msrb.mxu0 %v316_v16  ;;  %v134_v62 = vsub.f32 %v128_v47, %v130_v55  ;;  %v142_v63 = vmul.f32 0.5, %v130_v55  ;;  %889 = vrcp.f32 %v1001_v56  ;;  %v1007_v4 = vmul.f32 0.16666667, %v130_v55  ;;  %v407_v8 = vld [vmem:[#allocation2 + $0x2a0] sm:$0xff] }
  0x35   :  { %442 = vmatpush.msrb.mxu3 %v415_v15  ;;  %361 = vmatpush.msrb.mxu1 %v332_v17  ;;  %v135_v9 = vsub.f32 %v997_v48, %v131_v59  ;;  %v143_v10 = vmul.f32 0.5, %v131_v59  ;;  %v324_v15 = vld [vmem:[#allocation2 + $0x198] sm:$0xff]  ;;  %v67_v17 = vand.u32 2147483648, %v999_v52  ;;  %v1022_v20 = vmul.f32 0.16666667, %v131_v59  ;;  %v387_v59 = vld [vmem:[#allocation2 + $0x200] sm:$0xff] }
  0x36   :  { %423 = vmatpush.msrb.mxu2 %v398_v24  ;;  %342 = vmatpush.msrb.mxu0 %v315_v26  ;;  %v136_v5 = vadd.f32 %v134_v62, %v126_v40  ;;  %v144_v6 = vsub.f32 %v142_v63, %v128_v47  ;;  %v406_v24 = vld [vmem:[#allocation2 + $0x298] sm:$0xff]  ;;  %vm76_vm8 = vweird.f32 %v1001_v56  ;;  %v82_v40 = vand.u32 2147483648, %v1001_v56  ;;  %v388_v47 = vld [vmem:[#allocation2 + $0x208] sm:$0xff]  ;;  %v479_v63 = vld [vmem:[#allocation2 + $0x350] sm:$0xff] }
  0x37   :  { %443 = vmatpush.msrb.mxu3 %v414_v25  ;;  %362 = vmatpush.msrb.mxu1 %v331_v27  ;;  %v137_v21 = vadd.f32 %v135_v9, %v993_v41  ;;  %v145_v22 = vsub.f32 %v143_v10, %v997_v48  ;;  %v404_v48 = vld [vmem:[#allocation2 + $0x288] sm:$0xff]  ;;  %v68_v55 = vor.u32 1.1754944e-38, %v67_v17  ;;  %v578_v62 = vld [vmem:[#allocation2 + $0x4d8] sm:$0xff] }
  0x38   :  { %424 = vmatpush.msrb.mxu2 %v397_v30  ;;  %343 = vmatpush.msrb.mxu0 %v314_v32  ;;  %v138_v13 = vmul.f32 0.5, %v136_v5  ;;  %v1015_v14 = vadd.f32 0.6666667, %v144_v6  ;;  %v389_v30 = vld [vmem:[#allocation2 + $0x210] sm:$0xff] }
  0x39   :  { %444 = vmatpush.msrb.mxu3 %v413_v31  ;;  %363 = vmatpush.msrb.mxu1 %v330_v33  ;;  %v1019_v16 = vpop.eup %887  ;;  %v148_v31 = vsub.f32 1.0, %v1007_v4  ;;  %v80_v33 = vand.u32 2147483647, %v1001_v56 }
  0x3a   :  { %425 = vmatpush.msrb.mxu2 %v396_v36  ;;  %344 = vmatpush.msrb.mxu0 %v313_v38  ;;  %v1028_v25 = vpop.eup %889  ;;  %v57_v26 = vmul.f32 %v1019_v16, %v999_v52  ;;  %v1032_v27 = vadd.f32 0.16666667, %v138_v13  ;;  %v139_v36 = vmul.f32 0.5, %v137_v21  ;;  %v405_v38 = vld [vmem:[#allocation2 + $0x290] sm:$0xff]  ;;  %vm62_vm11 = vweird.f32 %v1019_v16 }
  0x3b   :  { %445 = vmatpush.msrb.mxu3 %v412_v37  ;;  %364 = vmatpush.msrb.mxu1 %v329_v39  ;;  %v72_v32 = vmul.f32 %v1028_v25, %v1001_v56  ;;  %v1040_v37 = vadd.f32 0.6666667, %v145_v22  ;;  %vm77_vm12 = vweird.f32 %v1028_v25  ;;  %vm1060_vm15 = vmor %vm61_vm3, %vm62_vm11  ;;  %vm1071_vm3 = vcmp.eq.f32.partialorder %v65_v12, 8.507059e+37 }
  0x3c   :  { %426 = vmatpush.msrb.mxu2 %v395_v42  ;;  %345 = vmatpush.msrb.mxu0 %v312_v45  ;;  %v58_v39 = vsub.f32 1.0, %v57_v26  ;;  %v150_v41 = vadd.f32 %v1015_v14, %v1032_v27  ;;  %v306_v42 = vld [vmem:[#allocation2 + $0x108] sm:$0xff]  ;;  %v1048_v45 = vadd.f32 0.16666667, %v139_v36  ;;  %vm1079_vm11 = vmor %vm76_vm8, %vm77_vm12  ;;  %vm1087_vm10 = vcmp.eq.f32.partialorder %v80_v33, 8.507059e+37  ;;  %v565_v33 = vld [vmem:[#allocation2 + $0x470] sm:$0xff] }
  0x3d   :  { %446 = vmatpush.msrb.mxu3 %v411_v43  ;;  %365 = vmatpush.msrb.mxu1 %v328_v46  ;;  %v322_v43 = vld [vmem:[#allocation2 + $0x188] sm:$0xff]  ;;  %v73_v44 = vsub.f32 1.0, %v72_v32  ;;  %v149_v46 = vsub.f32 1.0, %v1022_v20  ;;  %vm1316_vm8 = vcmp.eq.f32.partialorder %v989_v35, 4.0  ;;  %v499_v32 = vld [vmem:[#allocation2 + $0x3f0] sm:$0xff] }
  0x3e   :  { %427 = vmatpush.msrb.mxu2 %v394_v50  ;;  %346 = vmatpush.msrb.mxu0 %v311_v53  ;;  %v59_v49 = vmul.f32 %v1019_v16, %v58_v39  ;;  %v1052_v50 = vsub.f32 %v148_v31, %v150_v41  ;;  %v321_v53 = vld [vmem:[#allocation2 + $0x180] sm:$0xff]  ;;  %v482_v41 = vld [vmem:[#allocation2 + $0x368] sm:$0xff]  ;;  %vm1318_vm12 = vmmov %vm1316_vm8 }
  0x3f   :  { %447 = vmatpush.msrb.mxu3 %v410_v51  ;;  %366 = vmatpush.msrb.mxu1 %v327_v54  ;;  %v305_v51 = vld [vmem:[#allocation2 + $0x100] sm:$0xff] }
  0x40   :  { %428 = vmatpush.msrb.mxu2 %v393_v57  ;;  %347 = vmatpush.msrb.mxu0 %v310_v60  ;;  %v74_v57 = vmul.f32 %v1028_v25, %v73_v44  ;;  %v403_v60 = vld [vmem:[#allocation2 + $0x280] sm:$0xff]  ;;  %v296_v9 = vsel %vm162_vm7, %v1052_v50, 0.0 }
  0x41   :  { %448 = vmatpush.msrb.mxu3 %v409_v58  ;;  %367 = vmatpush.msrb.mxu1 %v326_v61  ;;  %v151_v58 = vadd.f32 %v1040_v37, %v1048_v45  ;;  %v60_v61 = vadd.f32 %v1019_v16, %v59_v49 }
  0x42   :  { %429 = vmatpush.msrb.mxu2 %v392_v0  ;;  %348 = vmatpush.msrb.mxu0 %v309_v2  ;;  %v83_v0 = vor.u32 1.1754944e-38, %v82_v40  ;;  %v75_v52 = vadd.f32 %v1028_v25, %v74_v57  ;;  %v581_v40 = vld [vmem:[#allocation2 + $0x4f0] sm:$0xff]  ;;  %v563_v57 = vld [vmem:[#allocation2 + $0x460] sm:$0xff]  ;;  %v478_v2 = vld [vmem:[#allocation2 + $0x348] sm:$0xff] }
  0x43   :  { %449 = vmatpush.msrb.mxu3 %v408_v1  ;;  %368 = vmatpush.msrb.mxu1 %v325_v3  ;;  %v176_v1 = vsel %vm160_vm2, %v1052_v50, 0.0  ;;  %v1094_v3 = vsub.f32 %v149_v46, %v151_v58  ;;  %v64_v5 = vsel %vm1060_vm15, %v1019_v16, %v60_v61  ;;  %v498_v46 = vld [vmem:[#allocation2 + $0x3e8] sm:$0xff]  ;;  %v579_v58 = vld [vmem:[#allocation2 + $0x4e0] sm:$0xff]  ;;  %v562_v61 = vld [vmem:[#allocation2 + $0x458] sm:$0xff] }
  0x44   :  { %430 = vmatpush.msrb.mxu2 %v391_v7  ;;  %349 = vmatpush.msrb.mxu0 %v308_v11  ;;  %v178_v56 = vsel %vm158_vm1, %v1015_v14, %v176_v1  ;;  %v378_v7 = vsel %vm164_vm13, %v1052_v50, 0.0  ;;  %v69_v10 = vsel %vm1071_vm3, %v68_v55, %v64_v5  ;;  %v79_v11 = vsel %vm1079_vm11, %v1028_v25, %v75_v52  ;;  %v566_v25 = vld [vmem:[#allocation2 + $0x478] sm:$0xff]  ;;  %v497_v55 = vld [vmem:[#allocation2 + $0x3e0] sm:$0xff]  ;;  %v561_v1 = vld [vmem:[#allocation2 + $0x450] sm:$0xff] }
  0x45   :  { %450 = vmatpush.msrb.mxu3 %v407_v8  ;;  %369 = vmatpush.msrb.mxu1 %v324_v15  ;;  %v180_v6 = vsel %vm156_vm0, %v1032_v27, %v178_v56  ;;  %v484_v8 = vld [vmem:[#allocation2 + $0x378] sm:$0xff]  ;;  %v177_v13 = vsel %vm161_vm5, %v1094_v3, 0.0  ;;  %v86_v15 = vmul.f32 %v69_v10, %v976_v18  ;;  %v84_v16 = vsel %vm1087_vm10, %v83_v0, %v79_v11  ;;  %vm1317_vm10 = vmmov %vm1316_vm8  ;;  %v495_v0 = vld [vmem:[#allocation2 + $0x3d0] sm:$0xff] }
  0x46   :  { %431 = vmatpush.msrb.mxu2 %v390_v23  ;;  %350 = vmatpush.msrb.mxu0 %v307_v28  ;;  %v182_v12 = vsel %vm154_vm4, %v1007_v4, %v180_v6  ;;  %v179_v17 = vsel %vm159_vm6, %v1040_v37, %v177_v13  ;;  %v87_v21 = vmul.f32 %v84_v16, %v981_v19  ;;  %v379_v18 = vsel %vm165_vm14, %v1094_v3, 0.0  ;;  %v582_v28 = vld [vmem:[#allocation2 + $0x4f8] sm:$0xff]  ;;  %v577_v52 = vld [vmem:[#allocation2 + $0x4d0] sm:$0xff]  ;;  %v494_v56 = vld [vmem:[#allocation2 + $0x3c8] sm:$0xff] }
  0x47   :  { %451 = vmatpush.msrb.mxu3 %v406_v24  ;;  %370 = vmatpush.msrb.mxu1 %v323_v29  ;;  %v181_v22 = vsel %vm157_vm9, %v1048_v45, %v179_v17  ;;  %v380_v23 = vsel %vm162_vm7, %v1015_v14, %v378_v7  ;;  %v500_v24 = vld [vmem:[#allocation2 + $0x3f8] sm:$0xff]  ;;  %vm1315_vm4 = vcmp.eq.f32.partialorder %v989_v35, 0.0  ;;  %v381_v26 = vsel %vm1316_vm8, %v1040_v37, %v379_v18  ;;  %v483_v29 = vld [vmem:[#allocation2 + $0x370] sm:$0xff]  ;;  %v560_v5 = vld [vmem:[#allocation2 + $0x448] sm:$0xff] }
  0x48   :  { %432 = vmatpush.msrb.mxu2 %v389_v30  ;;  %351 = vmatpush.msrb.mxu0 %v306_v42  ;;  %v183_v19 = vsel %vm1315_vm4, %v1022_v20, %v181_v22  ;;  %v298_v30 = vsel %vm160_vm2, %v1015_v14, %v296_v9  ;;  %v297_v31 = vsel %vm1317_vm10, %v1094_v3, 0.0  ;;  %v382_v39 = vsel %vm160_vm2, %v1032_v27, %v380_v23  ;;  %v576_v6 = vld [vmem:[#allocation2 + $0x4c8] sm:$0xff]  ;;  %v477_v7 = vld [vmem:[#allocation2 + $0x340] sm:$0xff]  ;;  %v476_v11 = vld [vmem:[#allocation2 + $0x338] sm:$0xff] }
  0x49   :  { %452 = vmatpush.msrb.mxu3 %v405_v38  ;;  %371 = vmatpush.msrb.mxu1 %v322_v43  ;;  %v300_v36 = vsel %vm158_vm1, %v1032_v27, %v298_v30  ;;  %v299_v38 = vsel %vm161_vm5, %v1040_v37, %v297_v31  ;;  %v383_v42 = vsel %vm161_vm5, %v1048_v45, %v381_v26  ;;  %v559_v9 = vld [vmem:[#allocation2 + $0x440] sm:$0xff]  ;;  %v558_v13 = vld [vmem:[#allocation2 + $0x438] sm:$0xff]  ;;  %v475_v16 = vld [vmem:[#allocation2 + $0x330] sm:$0xff]  ;;  %vm173_vm3 = vcmp.eq.f32.partialorder %v989_v35, 9.0 }
  0x4a   :  { %433 = vmatpush.msrb.mxu2 %v388_v47  ;;  %352 = vmatpush.msrb.mxu0 %v305_v51  ;;  %v302_v43 = vsel %vm156_vm0, %v1007_v4, %v300_v36  ;;  %v301_v44 = vsel %vm159_vm6, %v1048_v45, %v299_v38  ;;  %v564_v47 = vld [vmem:[#allocation2 + $0x468] sm:$0xff]  ;;  %v384_v49 = vsel %vm158_vm1, %v1007_v4, %v382_v39  ;;  %v481_v51 = vld [vmem:[#allocation2 + $0x360] sm:$0xff]  ;;  %v491_v17 = vld [vmem:[#allocation2 + $0x3b0] sm:$0xff]  ;;  %vm166_vm0 = vcmp.eq.f32.partialorder %v987_v34, 6.0 }
  0x4b   :  { %453 = vmatpush.msrb.mxu3 %v404_v48  ;;  %372 = vmatpush.msrb.mxu1 %v321_v53  ;;  %v580_v48 = vld [vmem:[#allocation2 + $0x4e8] sm:$0xff]  ;;  %v385_v53 = vsel %vm159_vm6, %v1022_v20, %v383_v42  ;;  %v303_v54 = vsel %vm157_vm9, %v1022_v20, %v301_v44  ;;  %v575_v10 = vld [vmem:[#allocation2 + $0x4c0] sm:$0xff]  ;;  %v573_v22 = vld [vmem:[#allocation2 + $0x4b0] sm:$0xff]  ;;  %vm167_vm1 = vcmp.eq.f32.partialorder %v989_v35, 6.0  ;;  %vm168_vm6 = vcmp.eq.f32.partialorder %v987_v34, 7.0 }
  0x4c   :  { %434 = vmatpush.msrb.mxu2 %v387_v59  ;;  %232 = vmatmul.f32.vlgmr.msra.gmra.mxu0 %v182_v12  ;;  %v480_v59 = vld [vmem:[#allocation2 + $0x358] sm:$0xff]  ;;  %v474_v23 = vld [vmem:[#allocation2 + $0x328] sm:$0xff]  ;;  %vm169_vm9 = vcmp.eq.f32.partialorder %v989_v35, 7.0  ;;  %v489_v26 = vld [vmem:[#allocation2 + $0x3a0] sm:$0xff] }
  0x4d   :  { %454 = vmatpush.msrb.mxu3 %v403_v60  ;;  %501 = vmatpush.msra.mxu0 %v484_v8  ;;  %v496_v60 = vld [vmem:[#allocation2 + $0x3d8] sm:$0xff]  ;;  %v493_v8 = vld [vmem:[#allocation2 + $0x3c0] sm:$0xff]  ;;  %v490_v18 = vld [vmem:[#allocation2 + $0x3a8] sm:$0xff]  ;;  %v543_v39 = vsel %vm169_vm9, %v1094_v3, 0.0 }
  0x4e   :  { %272 = vmatmul.f32.vlgmr.msra.gmra.mxu2 %v86_v15  ;;  %292 = vmatmul.f32.vlgmr.msra.gmra.mxu3 %v87_v21  ;;  %v492_v12 = vld [vmem:[#allocation2 + $0x3b8] sm:$0xff]  ;;  %v557_v21 = vld [vmem:[#allocation2 + $0x430] sm:$0xff]  ;;  %v571_v30 = vld [vmem:[#allocation2 + $0x4a0] sm:$0xff] }
  0x4f   :  { %252 = vmatmul.f32.vlgmr.msra.gmra.mxu1 %v183_v19  ;;  %583 = vmatpush.msra.mxu2 %v566_v25  ;;  %v574_v15 = vld [vmem:[#allocation2 + $0x4b8] sm:$0xff]  ;;  %v572_v25 = vld [vmem:[#allocation2 + $0x4a8] sm:$0xff]  ;;  %v473_v19 = vld [vmem:[#allocation2 + $0x320] sm:$0xff] }
  0x50   :  { %521 = vmatpush.msra.mxu1 %v500_v24  ;;  %603 = vmatpush.msra.mxu3 %v582_v28  ;;  %v556_v24 = vld [vmem:[#allocation2 + $0x428] sm:$0xff]  ;;  %v555_v28 = vld [vmem:[#allocation2 + $0x420] sm:$0xff]  ;;  %v472_v31 = vld [vmem:[#allocation2 + $0x318] sm:$0xff] }
  0x51   :  { %502 = vmatpush.msra.mxu0 %v483_v29  ;;  %584 = vmatpush.msra.mxu2 %v565_v33  ;;  %v460_v29 = vsel %vm166_vm0, %v1052_v50, 0.0  ;;  %v542_v33 = vsel %vm168_vm6, %v1052_v50, 0.0  ;;  %v488_v36 = vld [vmem:[#allocation2 + $0x398] sm:$0xff]  ;;  %v553_v44 = vld [vmem:[#allocation2 + $0x410] sm:$0xff]  ;;  %vm1319_vm15 = vmmov %vm1316_vm8 }
  0x52   :  { %522 = vmatpush.msra.mxu1 %v499_v32  ;;  %604 = vmatpush.msra.mxu3 %v581_v40  ;;  %v461_v32 = vsel %vm167_vm1, %v1094_v3, 0.0  ;;  %v554_v38 = vld [vmem:[#allocation2 + $0x418] sm:$0xff]  ;;  %v462_v42 = vsel %vm164_vm13, %v1015_v14, %v460_v29  ;;  %v659_v29 = vld [vmem:[#allocation2 + $0x5d0] sm:$0xff] }
  0x53   :  { %503 = vmatpush.msra.mxu0 %v482_v41  ;;  %585 = vmatpush.msra.mxu2 %v564_v47  ;;  %v570_v40 = vld [vmem:[#allocation2 + $0x498] sm:$0xff]  ;;  %v471_v41 = vld [vmem:[#allocation2 + $0x310] sm:$0xff]  ;;  %v544_v47 = vsel %vm166_vm0, %v1015_v14, %v542_v33  ;;  %v658_v33 = vld [vmem:[#allocation2 + $0x5c8] sm:$0xff] }
  0x54   :  { %353 = vmatmul.f32.vlgmr.msrb.gmra.mxu0 %v302_v43  ;;  %523 = vmatpush.msra.mxu1 %v498_v46  ;;  %v487_v43 = vld [vmem:[#allocation2 + $0x390] sm:$0xff]  ;;  %v463_v46 = vsel %vm165_vm14, %v1040_v37, %v461_v32  ;;  %v642_v32 = vld [vmem:[#allocation2 + $0x548] sm:$0xff] }
  0x55   :  { %605 = vmatpush.msra.mxu3 %v580_v48  ;;  %504 = vmatpush.msra.mxu0 %v481_v51  ;;  %v569_v48 = vld [vmem:[#allocation2 + $0x490] sm:$0xff]  ;;  %v545_v51 = vsel %vm167_vm1, %v1040_v37, %v543_v39  ;;  %v641_v39 = vld [vmem:[#allocation2 + $0x540] sm:$0xff] }
  0x56   :  { %435 = vmatmul.f32.vlgmr.msrb.gmra.mxu2 %v384_v49  ;;  %455 = vmatmul.f32.vlgmr.msrb.gmra.mxu3 %v385_v53  ;;  %v470_v49 = vld [vmem:[#allocation2 + $0x308] sm:$0xff] }
  0x57   :  { %373 = vmatmul.f32.vlgmr.msrb.gmra.mxu1 %v303_v54  ;;  %586 = vmatpush.msra.mxu2 %v563_v57  ;;  %v486_v53 = vld [vmem:[#allocation2 + $0x388] sm:$0xff] }
  0x58   :  { %524 = vmatpush.msra.mxu1 %v497_v55  ;;  %606 = vmatpush.msra.mxu3 %v579_v58  ;;  %v552_v54 = vld [vmem:[#allocation2 + $0x408] sm:$0xff]  ;;  %v464_v55 = vsel %vm162_vm7, %v1032_v27, %v462_v42  ;;  %v469_v58 = vld [vmem:[#allocation2 + $0x300] sm:$0xff] }
  0x59   :  { %505 = vmatpush.msra.mxu0 %v480_v59  ;;  %587 = vmatpush.msra.mxu2 %v562_v61  ;;  %v568_v57 = vld [vmem:[#allocation2 + $0x488] sm:$0xff]  ;;  %v465_v59 = vsel %vm1318_vm12, %v1048_v45, %v463_v46  ;;  %v485_v61 = vld [vmem:[#allocation2 + $0x380] sm:$0xff]  ;;  %v722_v46 = vld [vmem:[#allocation2 + $0x638] sm:$0xff] }
  0x5a   :  { %525 = vmatpush.msra.mxu1 %v496_v60  ;;  %607 = vmatpush.msra.mxu3 %v578_v62  ;;  %v546_v60 = vsel %vm164_vm13, %v1032_v27, %v544_v47  ;;  %v551_v62 = vld [vmem:[#allocation2 + $0x400] sm:$0xff]  ;;  %v738_v47 = vld [vmem:[#allocation2 + $0x6b8] sm:$0xff] }
  0x5b   :  { %506 = vmatpush.msra.mxu0 %v479_v63  ;;  %588 = vmatpush.msra.mxu2 %v561_v1  ;;  %v547_v63 = vsel %vm165_vm14, %v1048_v45, %v545_v51  ;;  %v466_v1 = vsel %vm160_vm2, %v1007_v4, %v464_v55  ;;  %v739_v42 = vld [vmem:[#allocation2 + $0x6c0] sm:$0xff]  ;;  %v721_v51 = vld [vmem:[#allocation2 + $0x630] sm:$0xff]  ;;  %vm170_vm2 = vcmp.eq.f32.partialorder %v987_v34, 8.0  ;;  %v654_v55 = vld [vmem:[#allocation2 + $0x5a8] sm:$0xff] }
  0x5c   :  { %526 = vmatpush.msra.mxu1 %v495_v0  ;;  %608 = vmatpush.msra.mxu3 %v577_v52  ;;  %v567_v0 = vld [vmem:[#allocation2 + $0x480] sm:$0xff]  ;;  %v467_v52 = vsel %vm161_vm5, %v1022_v20, %v465_v59  ;;  %vm171_vm5 = vcmp.eq.f32.partialorder %v989_v35, 8.0 }
  0x5d   :  { %507 = vmatpush.msra.mxu0 %v478_v2  ;;  %589 = vmatpush.msra.mxu2 %v560_v5  ;;  %v548_v2 = vsel %vm162_vm7, %v1007_v4, %v546_v60  ;;  %v648_v5 = vld [vmem:[#allocation2 + $0x578] sm:$0xff]  ;;  %vm172_vm7 = vcmp.eq.f32.partialorder %v987_v34, 9.0  ;;  %v637_v59 = vld [vmem:[#allocation2 + $0x520] sm:$0xff] }
  0x5e   :  { %527 = vmatpush.msra.mxu1 %v494_v56  ;;  %609 = vmatpush.msra.mxu3 %v576_v6  ;;  %v549_v56 = vsel %vm1319_vm15, %v1022_v20, %v547_v63  ;;  %v664_v6 = vld [vmem:[#allocation2 + $0x5f8] sm:$0xff]  ;;  %v653_v60 = vld [vmem:[#allocation2 + $0x5a0] sm:$0xff] }
  0x5f   :  { %508 = vmatpush.msra.mxu0 %v477_v7  ;;  %590 = vmatpush.msra.mxu2 %v559_v9  ;;  %v730_v7 = vld [vmem:[#allocation2 + $0x678] sm:$0xff]  ;;  %v647_v9 = vld [vmem:[#allocation2 + $0x570] sm:$0xff]  ;;  %v735_v63 = vld [vmem:[#allocation2 + $0x6a0] sm:$0xff] }
  0x60   :  { %528 = vmatpush.msra.mxu1 %v493_v8  ;;  %610 = vmatpush.msra.mxu3 %v575_v10  ;;  %v746_v8 = vld [vmem:[#allocation2 + $0x6f8] sm:$0xff]  ;;  %v663_v10 = vld [vmem:[#allocation2 + $0x5f0] sm:$0xff] }
  0x61   :  { %509 = vmatpush.msra.mxu0 %v476_v11  ;;  %591 = vmatpush.msra.mxu2 %v558_v13  ;;  %v729_v11 = vld [vmem:[#allocation2 + $0x670] sm:$0xff]  ;;  %v646_v13 = vld [vmem:[#allocation2 + $0x568] sm:$0xff] }
  0x62   :  { %529 = vmatpush.msra.mxu1 %v492_v12  ;;  %611 = vmatpush.msra.mxu3 %v574_v15  ;;  %v745_v12 = vld [vmem:[#allocation2 + $0x6f0] sm:$0xff]  ;;  %v662_v15 = vld [vmem:[#allocation2 + $0x5e8] sm:$0xff] }
  0x63   :  { %510 = vmatpush.msra.mxu0 %v475_v16  ;;  %592 = vmatpush.msra.mxu2 %v557_v21  ;;  %v728_v16 = vld [vmem:[#allocation2 + $0x668] sm:$0xff]  ;;  %v645_v21 = vld [vmem:[#allocation2 + $0x560] sm:$0xff] }
  0x64   :  { %530 = vmatpush.msra.mxu1 %v491_v17  ;;  %612 = vmatpush.msra.mxu3 %v573_v22  ;;  %v744_v17 = vld [vmem:[#allocation2 + $0x6e8] sm:$0xff]  ;;  %v661_v22 = vld [vmem:[#allocation2 + $0x5e0] sm:$0xff] }
  0x65   :  { %511 = vmatpush.msra.mxu0 %v474_v23  ;;  %593 = vmatpush.msra.mxu2 %v556_v24  ;;  %v727_v23 = vld [vmem:[#allocation2 + $0x660] sm:$0xff]  ;;  %v644_v24 = vld [vmem:[#allocation2 + $0x558] sm:$0xff] }
  0x66   :  { %531 = vmatpush.msra.mxu1 %v490_v18  ;;  %613 = vmatpush.msra.mxu3 %v572_v25  ;;  %v743_v18 = vld [vmem:[#allocation2 + $0x6e0] sm:$0xff]  ;;  %v660_v25 = vld [vmem:[#allocation2 + $0x5d8] sm:$0xff] }
  0x67   :  { %512 = vmatpush.msra.mxu0 %v473_v19  ;;  %594 = vmatpush.msra.mxu2 %v555_v28  ;;  %v726_v19 = vld [vmem:[#allocation2 + $0x658] sm:$0xff]  ;;  %v643_v28 = vld [vmem:[#allocation2 + $0x550] sm:$0xff] }
  0x68   :  { %532 = vmatpush.msra.mxu1 %v489_v26  ;;  %614 = vmatpush.msra.mxu3 %v571_v30  ;;  %v742_v26 = vld [vmem:[#allocation2 + $0x6d8] sm:$0xff]  ;;  %v725_v30 = vld [vmem:[#allocation2 + $0x650] sm:$0xff] }
  0x69   :  { %513 = vmatpush.msra.mxu0 %v472_v31  ;;  %595 = vmatpush.msra.mxu2 %v554_v38  ;;  %v741_v31 = vld [vmem:[#allocation2 + $0x6d0] sm:$0xff]  ;;  %v740_v38 = vld [vmem:[#allocation2 + $0x6c8] sm:$0xff] }
  0x6a   :  { %533 = vmatpush.msra.mxu1 %v488_v36  ;;  %615 = vmatpush.msra.mxu3 %v570_v40  ;;  %v724_v36 = vld [vmem:[#allocation2 + $0x648] sm:$0xff]  ;;  %v657_v40 = vld [vmem:[#allocation2 + $0x5c0] sm:$0xff] }
  0x6b   :  { %514 = vmatpush.msra.mxu0 %v471_v41  ;;  %596 = vmatpush.msra.mxu2 %v553_v44  ;;  %v723_v41 = vld [vmem:[#allocation2 + $0x640] sm:$0xff]  ;;  %v656_v44 = vld [vmem:[#allocation2 + $0x5b8] sm:$0xff] }
  0x6c   :  { %534 = vmatpush.msra.mxu1 %v487_v43  ;;  %616 = vmatpush.msra.mxu3 %v569_v48  ;;  %v640_v43 = vld [vmem:[#allocation2 + $0x538] sm:$0xff]  ;;  %v639_v48 = vld [vmem:[#allocation2 + $0x530] sm:$0xff] }
  0x6d   :  { %515 = vmatpush.msra.mxu0 %v470_v49  ;;  %597 = vmatpush.msra.mxu2 %v552_v54  ;;  %v655_v49 = vld [vmem:[#allocation2 + $0x5b0] sm:$0xff]  ;;  %v638_v54 = vld [vmem:[#allocation2 + $0x528] sm:$0xff] }
  0x6e   :  { %535 = vmatpush.msra.mxu1 %v486_v53  ;;  %617 = vmatpush.msra.mxu3 %v568_v57  ;;  %v737_v53 = vld [vmem:[#allocation2 + $0x6b0] sm:$0xff]  ;;  %v720_v57 = vld [vmem:[#allocation2 + $0x628] sm:$0xff] }
  0x6f   :  { %516 = vmatpush.msra.mxu0 %v469_v58  ;;  %598 = vmatpush.msra.mxu2 %v551_v62  ;;  %v736_v58 = vld [vmem:[#allocation2 + $0x6a8] sm:$0xff]  ;;  %v624_v62 = vsel %vm170_vm2, %v1052_v50, 0.0 }
  0x70   :  { %536 = vmatpush.msra.mxu1 %v485_v61  ;;  %618 = vmatpush.msra.mxu3 %v567_v0  ;;  %v719_v61 = vld [vmem:[#allocation2 + $0x620] sm:$0xff]  ;;  %v636_v0 = vld [vmem:[#allocation2 + $0x518] sm:$0xff] }
  0x71   :  { %517 = vmatmul.f32.vlgmr.msra.gmra.mxu0 %v466_v1  ;;  %537 = vmatmul.f32.vlgmr.msra.gmra.mxu1 %v467_v52  ;;  %v625_v1 = vsel %vm171_vm5, %v1094_v3, 0.0  ;;  %v706_v52 = vsel %vm172_vm7, %v1052_v50, 0.0 }
  0x72   :  { %599 = vmatmul.f32.vlgmr.msra.gmra.mxu2 %v548_v2  ;;  %619 = vmatmul.f32.vlgmr.msra.gmra.mxu3 %v549_v56  ;;  %v652_v2 = vld [vmem:[#allocation2 + $0x598] sm:$0xff] }
  0x73   :  { %665 = vmatpush.msrb.mxu0 %v648_v5  ;;  %685 = vmatpush.msrb.mxu1 %v664_v6  ;;  %v718_v56 = vld [vmem:[#allocation2 + $0x618] sm:$0xff]  ;;  %v707_v5 = vsel %vm173_vm3, %v1094_v3, 0.0 }
  0x74   :  { %747 = vmatpush.msrb.mxu2 %v730_v7  ;;  %767 = vmatpush.msrb.mxu3 %v746_v8  ;;  %v734_v6 = vld [vmem:[#allocation2 + $0x698] sm:$0xff]  ;;  %v635_v7 = vld [vmem:[#allocation2 + $0x510] sm:$0xff]  ;;  %v626_v8 = vsel %vm168_vm6, %v1015_v14, %v624_v62  ;;  %v818_v62 = vld [vmem:[#allocation2 + $0x7a8] sm:$0xff] }
  0x75   :  { %666 = vmatpush.msrb.mxu0 %v647_v9  ;;  %686 = vmatpush.msrb.mxu1 %v663_v10  ;;  %v651_v9 = vld [vmem:[#allocation2 + $0x590] sm:$0xff] }
  0x76   :  { %748 = vmatpush.msrb.mxu2 %v729_v11  ;;  %768 = vmatpush.msrb.mxu3 %v745_v12  ;;  %v717_v10 = vld [vmem:[#allocation2 + $0x610] sm:$0xff]  ;;  %v627_v11 = vsel %vm169_vm9, %v1040_v37, %v625_v1  ;;  %v708_v12 = vsel %vm170_vm2, %v1015_v14, %v706_v52  ;;  %v817_v1 = vld [vmem:[#allocation2 + $0x7a0] sm:$0xff] }
  0x77   :  { %667 = vmatpush.msrb.mxu0 %v646_v13  ;;  %687 = vmatpush.msrb.mxu1 %v662_v15  ;;  %v733_v13 = vld [vmem:[#allocation2 + $0x690] sm:$0xff]  ;;  %v634_v15 = vld [vmem:[#allocation2 + $0x508] sm:$0xff] }
  0x78   :  { %749 = vmatpush.msrb.mxu2 %v728_v16  ;;  %769 = vmatpush.msrb.mxu3 %v744_v17  ;;  %v709_v16 = vsel %vm171_vm5, %v1040_v37, %v707_v5  ;;  %v650_v17 = vld [vmem:[#allocation2 + $0x588] sm:$0xff] }
  0x79   :  { %668 = vmatpush.msrb.mxu0 %v645_v21  ;;  %688 = vmatpush.msrb.mxu1 %v661_v22  ;;  %v716_v21 = vld [vmem:[#allocation2 + $0x608] sm:$0xff]  ;;  %v628_v22 = vsel %vm166_vm0, %v1032_v27, %v626_v8 }
  0x7a   :  { %750 = vmatpush.msrb.mxu2 %v727_v23  ;;  %770 = vmatpush.msrb.mxu3 %v743_v18  ;;  %v732_v23 = vld [vmem:[#allocation2 + $0x688] sm:$0xff]  ;;  %v633_v18 = vld [vmem:[#allocation2 + $0x500] sm:$0xff] }
  0x7b   :  { %669 = vmatpush.msrb.mxu0 %v644_v24  ;;  %689 = vmatpush.msrb.mxu1 %v660_v25  ;;  %v629_v24 = vsel %vm167_vm1, %v1048_v45, %v627_v11  ;;  %v710_v25 = vsel %vm168_vm6, %v1032_v27, %v708_v12  ;;  %v798_v8 = vld [vmem:[#allocation2 + $0x708] sm:$0xff]  ;;  %v813_v11 = vld [vmem:[#allocation2 + $0x780] sm:$0xff] }
  0x7c   :  { %751 = vmatpush.msrb.mxu2 %v726_v19  ;;  %771 = vmatpush.msrb.mxu3 %v742_v26  ;;  %v649_v19 = vld [vmem:[#allocation2 + $0x580] sm:$0xff] }
  0x7d   :  { %670 = vmatpush.msrb.mxu0 %v643_v28  ;;  %690 = vmatpush.msrb.mxu1 %v659_v29  ;;  %v715_v26 = vld [vmem:[#allocation2 + $0x600] sm:$0xff]  ;;  %v711_v28 = vsel %vm169_vm9, %v1048_v45, %v709_v16 }
  0x7e   :  { %752 = vmatpush.msrb.mxu2 %v725_v30  ;;  %772 = vmatpush.msrb.mxu3 %v741_v31  ;;  %v731_v29 = vld [vmem:[#allocation2 + $0x680] sm:$0xff]  ;;  %v630_v30 = vsel %vm164_vm13, %v1007_v4, %v628_v22  ;;  %v631_v31 = vsel %vm165_vm14, %v1022_v20, %v629_v24  ;;  %vm174_vm13 = vcmp.eq.f32.partialorder %v987_v34, 10.0  ;;  %vm175_vm14 = vcmp.eq.f32.partialorder %v989_v35, 10.0 }
  0x7f   :  { %671 = vmatpush.msrb.mxu0 %v642_v32  ;;  %691 = vmatpush.msrb.mxu1 %v658_v33  ;;  %v712_v32 = vsel %vm166_vm0, %v1007_v4, %v710_v25  ;;  %v713_v33 = vsel %vm167_vm1, %v1022_v20, %v711_v28  ;;  %v789_v52 = vsel %vm175_vm14, %v1094_v3, 0.0 }
  0x80   :  { %753 = vmatpush.msrb.mxu2 %v724_v36  ;;  %773 = vmatpush.msrb.mxu3 %v740_v38  ;;  %v812_v36 = vld [vmem:[#allocation2 + $0x778] sm:$0xff] }
  0x81   :  { %672 = vmatpush.msrb.mxu0 %v641_v39  ;;  %692 = vmatpush.msrb.mxu1 %v657_v40  ;;  %v828_v38 = vld [vmem:[#allocation2 + $0x7f8] sm:$0xff]  ;;  %v811_v39 = vld [vmem:[#allocation2 + $0x770] sm:$0xff] }
  0x82   :  { %754 = vmatpush.msrb.mxu2 %v723_v41  ;;  %774 = vmatpush.msrb.mxu3 %v739_v42  ;;  %v827_v40 = vld [vmem:[#allocation2 + $0x7f0] sm:$0xff]  ;;  %v810_v41 = vld [vmem:[#allocation2 + $0x768] sm:$0xff] }
  0x83   :  { %673 = vmatpush.msrb.mxu0 %v640_v43  ;;  %693 = vmatpush.msrb.mxu1 %v656_v44  ;;  %v826_v42 = vld [vmem:[#allocation2 + $0x7e8] sm:$0xff]  ;;  %v809_v43 = vld [vmem:[#allocation2 + $0x760] sm:$0xff] }
  0x84   :  { %755 = vmatpush.msrb.mxu2 %v722_v46  ;;  %775 = vmatpush.msrb.mxu3 %v738_v47  ;;  %v825_v44 = vld [vmem:[#allocation2 + $0x7e0] sm:$0xff]  ;;  %v808_v46 = vld [vmem:[#allocation2 + $0x758] sm:$0xff] }
  0x85   :  { %674 = vmatpush.msrb.mxu0 %v639_v48  ;;  %694 = vmatpush.msrb.mxu1 %v655_v49  ;;  %v824_v47 = vld [vmem:[#allocation2 + $0x7d8] sm:$0xff]  ;;  %v807_v48 = vld [vmem:[#allocation2 + $0x750] sm:$0xff] }
  0x86   :  { %756 = vmatpush.msrb.mxu2 %v721_v51  ;;  %776 = vmatpush.msrb.mxu3 %v737_v53  ;;  %v823_v49 = vld [vmem:[#allocation2 + $0x7d0] sm:$0xff]  ;;  %v806_v51 = vld [vmem:[#allocation2 + $0x748] sm:$0xff] }
  0x87   :  { %675 = vmatpush.msrb.mxu0 %v638_v54  ;;  %695 = vmatpush.msrb.mxu1 %v654_v55  ;;  %v822_v53 = vld [vmem:[#allocation2 + $0x7c8] sm:$0xff]  ;;  %v805_v54 = vld [vmem:[#allocation2 + $0x740] sm:$0xff] }
  0x88   :  { %757 = vmatpush.msrb.mxu2 %v720_v57  ;;  %777 = vmatpush.msrb.mxu3 %v736_v58  ;;  %v821_v55 = vld [vmem:[#allocation2 + $0x7c0] sm:$0xff]  ;;  %v804_v57 = vld [vmem:[#allocation2 + $0x738] sm:$0xff] }
  0x89   :  { %676 = vmatpush.msrb.mxu0 %v637_v59  ;;  %696 = vmatpush.msrb.mxu1 %v653_v60  ;;  %v820_v58 = vld [vmem:[#allocation2 + $0x7b8] sm:$0xff]  ;;  %v803_v59 = vld [vmem:[#allocation2 + $0x730] sm:$0xff] }
  0x8a   :  { %758 = vmatpush.msrb.mxu2 %v719_v61  ;;  %778 = vmatpush.msrb.mxu3 %v735_v63  ;;  %v819_v60 = vld [vmem:[#allocation2 + $0x7b0] sm:$0xff]  ;;  %v802_v61 = vld [vmem:[#allocation2 + $0x728] sm:$0xff]  ;;  %v801_v63 = vld [vmem:[#allocation2 + $0x720] sm:$0xff] }
  0x8b   :  { %677 = vmatpush.msrb.mxu0 %v636_v0  ;;  %697 = vmatpush.msrb.mxu1 %v652_v2  ;;  %v788_v0 = vsel %vm174_vm13, %v1052_v50, 0.0  ;;  %v800_v2 = vld [vmem:[#allocation2 + $0x718] sm:$0xff]  ;;  %v815_v50 = vld [vmem:[#allocation2 + $0x790] sm:$0xff] }
  0x8c   :  { %759 = vmatpush.msrb.mxu2 %v718_v56  ;;  %779 = vmatpush.msrb.mxu3 %v734_v6  ;;  %v816_v56 = vld [vmem:[#allocation2 + $0x798] sm:$0xff]  ;;  %v790_v5 = vsel %vm172_vm7, %v1015_v14, %v788_v0  ;;  %v799_v6 = vld [vmem:[#allocation2 + $0x710] sm:$0xff] }
  0x8d   :  { %678 = vmatpush.msrb.mxu0 %v635_v7  ;;  %698 = vmatpush.msrb.mxu1 %v651_v9  ;;  %v791_v7 = vsel %vm173_vm3, %v1040_v37, %v789_v52  ;;  %v792_v3 = vsel %vm170_vm2, %v1032_v27, %v790_v5  ;;  %v814_v9 = vld [vmem:[#allocation2 + $0x788] sm:$0xff] }
  0x8e   :  { %760 = vmatpush.msrb.mxu2 %v717_v10  ;;  %780 = vmatpush.msrb.mxu3 %v733_v13  ;;  %v793_v14 = vsel %vm171_vm5, %v1048_v45, %v791_v7  ;;  %v797_v10 = vld [vmem:[#allocation2 + $0x700] sm:$0xff]  ;;  %v794_v37 = vsel %vm168_vm6, %v1007_v4, %v792_v3 }
  0x8f   :  { %679 = vmatpush.msrb.mxu0 %v634_v15  ;;  %699 = vmatpush.msrb.mxu1 %v650_v17  ;;  %v795_v12 = vsel %vm169_vm9, %v1022_v20, %v793_v14 }
  0x90   :  { %761 = vmatpush.msrb.mxu2 %v716_v21  ;;  %781 = vmatpush.msrb.mxu3 %v732_v23 }
  0x91   :  { %680 = vmatpush.msrb.mxu0 %v633_v18  ;;  %700 = vmatpush.msrb.mxu1 %v649_v19 }
  0x92   :  { %762 = vmatpush.msrb.mxu2 %v715_v26  ;;  %782 = vmatpush.msrb.mxu3 %v731_v29 }
  0x93   :  { %681 = vmatmul.f32.vlgmr.msrb.gmra.mxu0 %v630_v30  ;;  %701 = vmatmul.f32.vlgmr.msrb.gmra.mxu1 %v631_v31 }
  0x94   :  { %763 = vmatmul.f32.vlgmr.msrb.gmra.mxu2 %v712_v32  ;;  %783 = vmatmul.f32.vlgmr.msrb.gmra.mxu3 %v713_v33 }
  0x95   :  { %829 = vmatpush.msra.mxu0 %v812_v36  ;;  %849 = vmatpush.msra.mxu1 %v828_v38 }
  0x97   :  { %830 = vmatpush.msra.mxu0 %v811_v39  ;;  %850 = vmatpush.msra.mxu1 %v827_v40 }
  0x99   :  { %831 = vmatpush.msra.mxu0 %v810_v41  ;;  %851 = vmatpush.msra.mxu1 %v826_v42 }
  0x9b   :  { %832 = vmatpush.msra.mxu0 %v809_v43  ;;  %852 = vmatpush.msra.mxu1 %v825_v44 }
  0x9d   :  { %833 = vmatpush.msra.mxu0 %v808_v46  ;;  %853 = vmatpush.msra.mxu1 %v824_v47 }
  0x9f   :  { %834 = vmatpush.msra.mxu0 %v807_v48  ;;  %854 = vmatpush.msra.mxu1 %v823_v49 }
  0xa1   :  { %835 = vmatpush.msra.mxu0 %v806_v51  ;;  %855 = vmatpush.msra.mxu1 %v822_v53 }
  0xa3   :  { %836 = vmatpush.msra.mxu0 %v805_v54  ;;  %856 = vmatpush.msra.mxu1 %v821_v55 }
  0xa5   :  { %837 = vmatpush.msra.mxu0 %v804_v57  ;;  %857 = vmatpush.msra.mxu1 %v820_v58 }
  0xa7   :  { %838 = vmatpush.msra.mxu0 %v803_v59  ;;  %858 = vmatpush.msra.mxu1 %v819_v60 }
  0xa9   :  { %839 = vmatpush.msra.mxu0 %v802_v61  ;;  %859 = vmatpush.msra.mxu1 %v818_v62 }
  0xab   :  { %840 = vmatpush.msra.mxu0 %v801_v63  ;;  %860 = vmatpush.msra.mxu1 %v817_v1 }
  0xad   :  { %841 = vmatpush.msra.mxu0 %v800_v2  ;;  %861 = vmatpush.msra.mxu1 %v816_v56 }
  0xaf   :  { %842 = vmatpush.msra.mxu0 %v799_v6  ;;  %862 = vmatpush.msra.mxu1 %v815_v50 }
  0xb1   :  { %843 = vmatpush.msra.mxu0 %v798_v8  ;;  %863 = vmatpush.msra.mxu1 %v814_v9 }
  0xb3   :  { %844 = vmatpush.msra.mxu0 %v797_v10  ;;  %864 = vmatpush.msra.mxu1 %v813_v11 }
  0xb4   :  { %845 = vmatmul.f32.vlgmr.msra.gmra.mxu0 %v794_v37  ;;  %865 = vmatmul.f32.vlgmr.msra.gmra.mxu1 %v795_v12 }
  0xc9   :  { %v233_v27 = vpop.f32.mrf.mxu0 }
  0xcc   :  { %v253_v13 = vpop.f32.mrf.mxu1 }
  0xcd   :  { %v254_v21 = vadd.f32 %v253_v13, %v233_v27 }
  0xd1   :  { %v273_v45 = vpop.f32.mrf.mxu2  ;;  %v293_v15 = vpop.f32.mrf.mxu3 }
  0xd2   :  { %v354_v16 = vpop.f32.mrf.mxu0  ;;  %v274_v34 = vadd.f32 %v273_v45, %v254_v21 }
  0xd4   :  { %v374_v17 = vpop.f32.mrf.mxu1  ;;  %v294_v24 = vadd.f32 %v293_v15, %v274_v34 }
  0xd5   :  { %v375_v25 = vadd.f32 %v374_v17, %v354_v16 }
  0xd7   :  { %v377_v19 = vadd.f32 %v375_v25, %v294_v24 }
  0xd9   :  { %v436_v22 = vpop.f32.mrf.mxu2  ;;  %v456_v23 = vpop.f32.mrf.mxu3 }
  0xda   :  { %v457_v26 = vadd.f32 %v456_v23, %v436_v22 }
  0xdc   :  { %v459_v31 = vadd.f32 %v457_v26, %v377_v19 }
  0xee   :  { %v518_v4 = vpop.f32.mrf.mxu0  ;;  %v538_v18 = vpop.f32.mrf.mxu1 }
  0xef   :  { %v539_v28 = vadd.f32 %v538_v18, %v518_v4 }
  0xf1   :  { %v541_v38 = vadd.f32 %v539_v28, %v459_v31 }
  0xf5   :  { %v600_v35 = vpop.f32.mrf.mxu2  ;;  %v620_v20 = vpop.f32.mrf.mxu3 }
  0xf6   :  { %v621_v32 = vadd.f32 %v620_v20, %v600_v35 }
  0xf8   :  { %v623_v40 = vadd.f32 %v621_v32, %v541_v38 }
 0x110   :  { %v682_v29 = vpop.f32.mrf.mxu0  ;;  %v702_v30 = vpop.f32.mrf.mxu1 }
 0x111   :  { %v703_v39 = vadd.f32 %v702_v30, %v682_v29 }
 0x113   :  { %v705_v42 = vadd.f32 %v703_v39, %v623_v40 }
 0x117   :  { %v764_v33 = vpop.f32.mrf.mxu2  ;;  %v784_v36 = vpop.f32.mrf.mxu3 }
 0x118   :  { %v785_v41 = vadd.f32 %v784_v36, %v764_v33 }
 0x11a   :  { %v787_v46 = vadd.f32 %v785_v41, %v705_v42 }
 0x131   :  { %v846_v43 = vpop.f32.mrf.mxu0  ;;  %v866_v44 = vpop.f32.mrf.mxu1 }
 0x132   :  { %v867_v47 = vadd.f32 %v866_v44, %v846_v43 }
 0x134   :  { %v869_v48 = vadd.f32 %v867_v47, %v787_v46 }
 0x136   :  { %870 = vst [vmem:[%s1306_s3] sm:$0xff] %v869_v48 }
 0x137   :  { %875 = vsyncpa [#allocation3], 1 }
 0x138   :  { %876 = vsyncpa [#allocation5], 1 }

</bundles_post_ra>
